<compile_context>
chip_gen: v7x
topology: tpu7x:2x2x1
jax: 0.10.0
libtpu: 0.0.40
codegen_flags: <defaults>
</compile_context>

<pallas_src>
import jax
import jax.numpy as jnp
from jax import lax
from jax.experimental import pallas as pl
from jax.experimental.pallas import tpu as pltpu

EPS = 1e-5  # nn.BatchNorm2d default eps


def conv_block_kernel(xp_ref, b1_ref, b2_ref, bn_ref, out_ref, hp_ref):
    # Shapes (all static):
    #   xp_ref : (N, H+2, (W+2)*Cin)   bf16  zero-padded input, lane-dense
    #   b1_ref : (9*W*Cin,  W*Cout)    bf16  stacked block-diagonal conv1 weights
    #   b2_ref : (9*W*Cout, W*Cout)    bf16  stacked block-diagonal conv2 weights
    #   bn_ref : (4, Cout)             f32   rows: gamma1, beta1, gamma2, beta2
    #   out_ref: (N, H, W*Cout)        f32   lane-dense output slab
    #   hp_ref : (N, H+2, (W+2)*Cout)  bf16  scratch: padded post-BN1 activation
    N, Hp, WpCin = xp_ref.shape
    _, H, WCout = out_ref.shape
    Cout = bn_ref.shape[1]
    W = WCout // Cout
    Cin = WpCin // (W + 2)
    Mr = N * H
    inv_m = 1.0 / (N * H * W)

    def fold_w(row):  # (1, W*Cout) -> (1, Cout): sum the W channel groups (lane slices)
        acc = row[:, 0:Cout]
        for w in range(1, W):
            acc = acc + row[:, w * Cout:(w + 1) * Cout]
        return acc

    def bn_scale_shift(acc, g, beta):
        # Lane-dense acc is only ~4 f32 vregs, so exact f32 sums are negligible here.
        # TODO(synk): switch to two-pass / Welford stats once the kernel is row-tiled.
        rowsum = jnp.sum(acc, axis=0, keepdims=True)          # (1, W*Cout)
        rowsq = jnp.sum(acc * acc, axis=0, keepdims=True)     # (1, W*Cout)
        mu = fold_w(rowsum) * inv_m                            # (1, Cout)
        var = jnp.maximum(fold_w(rowsq) * inv_m - mu * mu, 0.0)
        scale = g * lax.rsqrt(var + EPS)
        shift = beta - mu * scale
        # broadcast per-channel scale/shift into the lane-dense (W*Cout) layout
        return jnp.tile(scale, (1, W)), jnp.tile(shift, (1, W))

    # ---------------- conv1: 9 shifted lane-slices -> concat -> one MXU matmul --------
    taps1 = [xp_ref[:, dy:dy + H, dx * Cin: dx * Cin + W * Cin]
             for dy in range(3) for dx in range(3)]
    p1 = jnp.concatenate(taps1, axis=-1).reshape(Mr, 9 * W * Cin)          # bf16
    acc1 = jnp.dot(p1, b1_ref[...], preferred_element_type=jnp.float32)    # (Mr, W*Cout)
    # conv bias intentionally omitted: exactly cancelled by train-mode BN mean.

    sc1, sh1 = bn_scale_shift(acc1, bn_ref[0:1, :], bn_ref[1:2, :])
    h1 = jnp.maximum(acc1 * sc1 + sh1, 0.0).astype(jnp.bfloat16)           # (Mr, W*Cout)

    # --------- stage post-BN1 activation in VMEM; zero only the halo stripes ----------
    hp_ref[:, 0:1, :] = jnp.zeros((N, 1, (W + 2) * Cout), jnp.bfloat16)
    hp_ref[:, H + 1:H + 2, :] = jnp.zeros((N, 1, (W + 2) * Cout), jnp.bfloat16)
    hp_ref[:, :, 0:Cout] = jnp.zeros((N, Hp, Cout), jnp.bfloat16)
    hp_ref[:, :, (W + 1) * Cout:(W + 2) * Cout] = jnp.zeros((N, Hp, Cout), jnp.bfloat16)
    hp_ref[:, 1:H + 1, Cout:(W + 1) * Cout] = h1.reshape(N, H, W * Cout)

    # ---------------- conv2: same pattern, taps sliced from the VMEM scratch ----------
    taps2 = [hp_ref[:, dy:dy + H, dx * Cout: dx * Cout + W * Cout]
             for dy in range(3) for dx in range(3)]
    p2 = jnp.concatenate(taps2, axis=-1).reshape(Mr, 9 * W * Cout)          # bf16
    acc2 = jnp.dot(p2, b2_ref[...], preferred_element_type=jnp.float32)     # (Mr, W*Cout)

    sc2, sh2 = bn_scale_shift(acc2, bn_ref[2:3, :], bn_ref[3:4, :])
    # BN2 + ReLU in the lane-dense layout; single unmasked full-width output store.
    out_ref[...] = jnp.maximum(acc2 * sc2 + sh2, 0.0).reshape(N, H, W * Cout)


def _stacked_blockdiag(w_oihw, width):
    """PyTorch conv weight (Cout, Cin, 3, 3) -> (9*width*Cin, width*Cout) bf16
    stacked block-diagonal matrix: rows are [tap k][w][ci], cols are [w][co]."""
    wt = jnp.transpose(w_oihw, (2, 3, 1, 0))                 # (3, 3, Cin, Cout)
    eye_w = jnp.eye(width, dtype=jnp.float32)
    blocks = [jnp.kron(eye_w, wt[dy, dx]) for dy in range(3) for dx in range(3)]
    return jnp.concatenate(blocks, axis=0).astype(jnp.bfloat16)


def conv_block_forward(x_nchw, params):
    """x_nchw: (N, Cin, H, W) float32.  Returns (N, Cout, H, W) float32."""
    w1, b1, g1, be1, w2, b2, g2, be2 = params
    del b1, b2  # no-ops before train-mode BatchNorm; not passed to the kernel.
    N, Cin, H, W = x_nchw.shape
    Cout = w1.shape[0]

    # NCHW -> NHWC, zero-pad spatially (padding=1), lane-dense flatten, bf16 operand.
    x = jnp.transpose(x_nchw, (0, 2, 3, 1))
    xp = jnp.pad(x, ((0, 0), (1, 1), (1, 1), (0, 0)))
    xp = xp.reshape(N, H + 2, (W + 2) * Cin).astype(jnp.bfloat16)

    b1k = _stacked_blockdiag(w1, W)                                   # (9*W*Cin,  W*Cout)
    b2k = _stacked_blockdiag(w2, W)                                   # (9*W*Cout, W*Cout)
    bn = jnp.stack([g1, be1, g2, be2], axis=0).astype(jnp.float32)    # (4, Cout)

    vmem = pl.BlockSpec(memory_space=pltpu.MemorySpace.VMEM)
    out_slab = pl.pallas_call(
        conv_block_kernel,
        out_shape=jax.ShapeDtypeStruct((N, H, W * Cout), jnp.float32),  # lane-dense slab
        in_specs=[vmem] * 4,
        out_specs=vmem,
        scratch_shapes=[pltpu.VMEM((N, H + 2, (W + 2) * Cout), jnp.bfloat16)],
        compiler_params=pltpu.CompilerParams(vmem_limit_bytes=8 * 1024 * 1024),
    )(xp, b1k, b2k, bn)

    out = out_slab.reshape(N, H, W, Cout)          # layout plumbing only
    return jnp.transpose(out, (0, 3, 1, 2))        # back to NCHW


# ---------------- reference (mirrors the PyTorch forward; same bf16 matmul policy) ----
def _bn_relu_ref(y, g, b):
    mu = y.mean(axis=(0, 2, 3), keepdims=True)
    var = ((y - mu) ** 2).mean(axis=(0, 2, 3), keepdims=True)
    y = (y - mu) / jnp.sqrt(var + EPS) * g[None, :, None, None] + b[None, :, None, None]
    return jnp.maximum(y, 0.0)


def conv_block_reference(x, params):
    """Exact module semantics (conv biases included); conv operands cast to bf16 with
    f32 accumulation to mirror the kernel's mixed-precision matmul policy."""
    w1, b1, g1, be1, w2, b2, g2, be2 = params
    dn = ('NCHW', 'OIHW', 'NCHW')
    y = lax.conv_general_dilated(x.astype(jnp.bfloat16), w1.astype(jnp.bfloat16),
                                 (1, 1), 'SAME', dimension_numbers=dn,
                                 preferred_element_type=jnp.float32)
    y = y + b1[None, :, None, None]
    y = _bn_relu_ref(y, g1, be1)
    y = lax.conv_general_dilated(y.astype(jnp.bfloat16), w2.astype(jnp.bfloat16),
                                 (1, 1), 'SAME', dimension_numbers=dn,
                                 preferred_element_type=jnp.float32)
    y = y + b2[None, :, None, None]
    y = _bn_relu_ref(y, g2, be2)
    return y


if __name__ == "__main__":
    # Small shapes consistent with the module: batch=2, ch_in=4, ch_out=8, spatial=16
    N, CH_IN, CH_OUT, H, W = 2, 4, 8, 16, 16

    key = jax.random.PRNGKey(0)
    kx, kw1, kb1, kw2, kb2, kg1, kbe1, kg2, kbe2 = jax.random.split(key, 9)

    x = jax.random.normal(kx, (N, CH_IN, H, W), jnp.float32)

    s1 = 1.0 / jnp.sqrt(CH_IN * 9.0)
    s2 = 1.0 / jnp.sqrt(CH_OUT * 9.0)
    w1 = jax.random.normal(kw1, (CH_OUT, CH_IN, 3, 3), jnp.float32) * s1
    b1 = jax.random.normal(kb1, (CH_OUT,), jnp.float32) * s1
    w2 = jax.random.normal(kw2, (CH_OUT, CH_OUT, 3, 3), jnp.float32) * s2
    b2 = jax.random.normal(kb2, (CH_OUT,), jnp.float32) * s2
    g1 = 1.0 + 0.1 * jax.random.normal(kg1, (CH_OUT,), jnp.float32)
    be1 = 0.1 * jax.random.normal(kbe1, (CH_OUT,), jnp.float32)
    g2 = 1.0 + 0.1 * jax.random.normal(kg2, (CH_OUT,), jnp.float32)
    be2 = 0.1 * jax.random.normal(kbe2, (CH_OUT,), jnp.float32)

    params = (w1, b1, g1, be1, w2, b2, g2, be2)

    out = jax.block_until_ready(conv_block_forward(x, params))
    ref = jax.block_until_ready(conv_block_reference(x, params))

    assert out.shape == (N, CH_OUT, H, W)
    # tolerance covers bf16 operand rounding (reference uses the same precision policy)
    assert jnp.allclose(out, ref, rtol=1e-2, atol=1e-2), float(jnp.abs(out - ref).max())

    print("KERNEL_OK")
</pallas_src>

<mosaic_0001>
module attributes {stable_mosaic.version = 11 : i64} {
  func.func @conv_block_kernel(%arg0: memref<2x18x72xbf16, #tpu.memory_space<vmem>>, %arg1: memref<576x128xbf16, #tpu.memory_space<vmem>>, %arg2: memref<1152x128xbf16, #tpu.memory_space<vmem>>, %arg3: memref<4x8xf32, #tpu.memory_space<vmem>>, %arg4: memref<2x16x128xf32, #tpu.memory_space<vmem>>, %arg5: memref<2x18x144xbf16, #tpu.memory_space<vmem>>) attributes {dimension_semantics = [], scalar_prefetch = 0 : i64, scratch_operands = 1 : i64, tpu.core_type = #tpu.core_type<tc>} {
    %c0 = arith.constant 0 : index
    %c0_0 = arith.constant 0 : index
    %c0_1 = arith.constant 0 : index
    %0 = vector.load %arg0[%c0, %c0_0, %c0_1] : memref<2x18x72xbf16, #tpu.memory_space<vmem>>, vector<2x16x64xbf16>
    %c0_2 = arith.constant 0 : index
    %c0_3 = arith.constant 0 : index
    %c4 = arith.constant 4 : index
    %1 = vector.load %arg0[%c0_2, %c0_3, %c4] : memref<2x18x72xbf16, #tpu.memory_space<vmem>>, vector<2x16x64xbf16>
    %c0_4 = arith.constant 0 : index
    %c0_5 = arith.constant 0 : index
    %c8 = arith.constant 8 : index
    %2 = vector.load %arg0[%c0_4, %c0_5, %c8] : memref<2x18x72xbf16, #tpu.memory_space<vmem>>, vector<2x16x64xbf16>
    %c0_6 = arith.constant 0 : index
    %c1 = arith.constant 1 : index
    %c0_7 = arith.constant 0 : index
    %3 = vector.load %arg0[%c0_6, %c1, %c0_7] : memref<2x18x72xbf16, #tpu.memory_space<vmem>>, vector<2x16x64xbf16>
    %c0_8 = arith.constant 0 : index
    %c1_9 = arith.constant 1 : index
    %c4_10 = arith.constant 4 : index
    %4 = vector.load %arg0[%c0_8, %c1_9, %c4_10] : memref<2x18x72xbf16, #tpu.memory_space<vmem>>, vector<2x16x64xbf16>
    %c0_11 = arith.constant 0 : index
    %c1_12 = arith.constant 1 : index
    %c8_13 = arith.constant 8 : index
    %5 = vector.load %arg0[%c0_11, %c1_12, %c8_13] : memref<2x18x72xbf16, #tpu.memory_space<vmem>>, vector<2x16x64xbf16>
    %c0_14 = arith.constant 0 : index
    %c2 = arith.constant 2 : index
    %c0_15 = arith.constant 0 : index
    %6 = vector.load %arg0[%c0_14, %c2, %c0_15] : memref<2x18x72xbf16, #tpu.memory_space<vmem>>, vector<2x16x64xbf16>
    %c0_16 = arith.constant 0 : index
    %c2_17 = arith.constant 2 : index
    %c4_18 = arith.constant 4 : index
    %7 = vector.load %arg0[%c0_16, %c2_17, %c4_18] : memref<2x18x72xbf16, #tpu.memory_space<vmem>>, vector<2x16x64xbf16>
    %c0_19 = arith.constant 0 : index
    %c2_20 = arith.constant 2 : index
    %c8_21 = arith.constant 8 : index
    %8 = vector.load %arg0[%c0_19, %c2_20, %c8_21] : memref<2x18x72xbf16, #tpu.memory_space<vmem>>, vector<2x16x64xbf16>
    %9 = tpu.concatenate %0, %1, %2, %3, %4, %5, %6, %7, %8 in 2 : vector<2x16x64xbf16>, vector<2x16x64xbf16>, vector<2x16x64xbf16>, vector<2x16x64xbf16>, vector<2x16x64xbf16>, vector<2x16x64xbf16>, vector<2x16x64xbf16>, vector<2x16x64xbf16>, vector<2x16x64xbf16> -> vector<2x16x576xbf16>
    %10 = vector.shape_cast %9 : vector<2x16x576xbf16> to vector<32x576xbf16>
    %c0_22 = arith.constant 0 : index
    %c0_23 = arith.constant 0 : index
    %11 = vector.load %arg1[%c0_22, %c0_23] : memref<576x128xbf16, #tpu.memory_space<vmem>>, vector<576x128xbf16>
    %cst = arith.constant dense<0.000000e+00> : vector<32x128xf32>
    %12 = tpu.matmul %10, %11, %cst {dimension_numbers = #tpu.dot_dimension_numbers<[1], [0], [0], [1], [0, 0, 1, 1], [], []>} : vector<32x576xbf16>, vector<576x128xbf16>, vector<32x128xf32> -> vector<32x128xf32>
    %c0_24 = arith.constant 0 : index
    %c0_25 = arith.constant 0 : index
    %13 = vector.load %arg3[%c0_24, %c0_25] : memref<4x8xf32, #tpu.memory_space<vmem>>, vector<1x8xf32>
    %c1_26 = arith.constant 1 : index
    %c0_27 = arith.constant 0 : index
    %14 = vector.load %arg3[%c1_26, %c0_27] : memref<4x8xf32, #tpu.memory_space<vmem>>, vector<1x8xf32>
    %cst_28 = arith.constant dense<0.000000e+00> : vector<128xf32>
    %15 = vector.multi_reduction <add>, %12, %cst_28 [0] : vector<32x128xf32> to vector<128xf32>
    %16 = vector.shape_cast %15 : vector<128xf32> to vector<1x128xf32>
    %17 = arith.mulf %12, %12 : vector<32x128xf32>
    %cst_29 = arith.constant dense<0.000000e+00> : vector<128xf32>
    %18 = vector.multi_reduction <add>, %17, %cst_29 [0] : vector<32x128xf32> to vector<128xf32>
    %19 = vector.shape_cast %18 : vector<128xf32> to vector<1x128xf32>
    %20 = vector.extract_strided_slice %16 {offsets = [0, 0], sizes = [1, 8], strides = [1, 1]} : vector<1x128xf32> to vector<1x8xf32>
    %21 = vector.extract_strided_slice %16 {offsets = [0, 8], sizes = [1, 8], strides = [1, 1]} : vector<1x128xf32> to vector<1x8xf32>
    %22 = arith.addf %20, %21 : vector<1x8xf32>
    %23 = vector.extract_strided_slice %16 {offsets = [0, 16], sizes = [1, 8], strides = [1, 1]} : vector<1x128xf32> to vector<1x8xf32>
    %24 = arith.addf %22, %23 : vector<1x8xf32>
    %25 = vector.extract_strided_slice %16 {offsets = [0, 24], sizes = [1, 8], strides = [1, 1]} : vector<1x128xf32> to vector<1x8xf32>
    %26 = arith.addf %24, %25 : vector<1x8xf32>
    %27 = vector.extract_strided_slice %16 {offsets = [0, 32], sizes = [1, 8], strides = [1, 1]} : vector<1x128xf32> to vector<1x8xf32>
    %28 = arith.addf %26, %27 : vector<1x8xf32>
    %29 = vector.extract_strided_slice %16 {offsets = [0, 40], sizes = [1, 8], strides = [1, 1]} : vector<1x128xf32> to vector<1x8xf32>
    %30 = arith.addf %28, %29 : vector<1x8xf32>
    %31 = vector.extract_strided_slice %16 {offsets = [0, 48], sizes = [1, 8], strides = [1, 1]} : vector<1x128xf32> to vector<1x8xf32>
    %32 = arith.addf %30, %31 : vector<1x8xf32>
    %33 = vector.extract_strided_slice %16 {offsets = [0, 56], sizes = [1, 8], strides = [1, 1]} : vector<1x128xf32> to vector<1x8xf32>
    %34 = arith.addf %32, %33 : vector<1x8xf32>
    %35 = vector.extract_strided_slice %16 {offsets = [0, 64], sizes = [1, 8], strides = [1, 1]} : vector<1x128xf32> to vector<1x8xf32>
    %36 = arith.addf %34, %35 : vector<1x8xf32>
    %37 = vector.extract_strided_slice %16 {offsets = [0, 72], sizes = [1, 8], strides = [1, 1]} : vector<1x128xf32> to vector<1x8xf32>
    %38 = arith.addf %36, %37 : vector<1x8xf32>
    %39 = vector.extract_strided_slice %16 {offsets = [0, 80], sizes = [1, 8], strides = [1, 1]} : vector<1x128xf32> to vector<1x8xf32>
    %40 = arith.addf %38, %39 : vector<1x8xf32>
    %41 = vector.extract_strided_slice %16 {offsets = [0, 88], sizes = [1, 8], strides = [1, 1]} : vector<1x128xf32> to vector<1x8xf32>
    %42 = arith.addf %40, %41 : vector<1x8xf32>
    %43 = vector.extract_strided_slice %16 {offsets = [0, 96], sizes = [1, 8], strides = [1, 1]} : vector<1x128xf32> to vector<1x8xf32>
    %44 = arith.addf %42, %43 : vector<1x8xf32>
    %45 = vector.extract_strided_slice %16 {offsets = [0, 104], sizes = [1, 8], strides = [1, 1]} : vector<1x128xf32> to vector<1x8xf32>
    %46 = arith.addf %44, %45 : vector<1x8xf32>
    %47 = vector.extract_strided_slice %16 {offsets = [0, 112], sizes = [1, 8], strides = [1, 1]} : vector<1x128xf32> to vector<1x8xf32>
    %48 = arith.addf %46, %47 : vector<1x8xf32>
    %49 = vector.extract_strided_slice %16 {offsets = [0, 120], sizes = [1, 8], strides = [1, 1]} : vector<1x128xf32> to vector<1x8xf32>
    %50 = arith.addf %48, %49 : vector<1x8xf32>
    %cst_30 = arith.constant 0.001953125 : f32
    %51 = vector.broadcast %cst_30 : f32 to vector<1x8xf32>
    %52 = arith.mulf %50, %51 : vector<1x8xf32>
    %53 = vector.extract_strided_slice %19 {offsets = [0, 0], sizes = [1, 8], strides = [1, 1]} : vector<1x128xf32> to vector<1x8xf32>
    %54 = vector.extract_strided_slice %19 {offsets = [0, 8], sizes = [1, 8], strides = [1, 1]} : vector<1x128xf32> to vector<1x8xf32>
    %55 = arith.addf %53, %54 : vector<1x8xf32>
    %56 = vector.extract_strided_slice %19 {offsets = [0, 16], sizes = [1, 8], strides = [1, 1]} : vector<1x128xf32> to vector<1x8xf32>
    %57 = arith.addf %55, %56 : vector<1x8xf32>
    %58 = vector.extract_strided_slice %19 {offsets = [0, 24], sizes = [1, 8], strides = [1, 1]} : vector<1x128xf32> to vector<1x8xf32>
    %59 = arith.addf %57, %58 : vector<1x8xf32>
    %60 = vector.extract_strided_slice %19 {offsets = [0, 32], sizes = [1, 8], strides = [1, 1]} : vector<1x128xf32> to vector<1x8xf32>
    %61 = arith.addf %59, %60 : vector<1x8xf32>
    %62 = vector.extract_strided_slice %19 {offsets = [0, 40], sizes = [1, 8], strides = [1, 1]} : vector<1x128xf32> to vector<1x8xf32>
    %63 = arith.addf %61, %62 : vector<1x8xf32>
    %64 = vector.extract_strided_slice %19 {offsets = [0, 48], sizes = [1, 8], strides = [1, 1]} : vector<1x128xf32> to vector<1x8xf32>
    %65 = arith.addf %63, %64 : vector<1x8xf32>
    %66 = vector.extract_strided_slice %19 {offsets = [0, 56], sizes = [1, 8], strides = [1, 1]} : vector<1x128xf32> to vector<1x8xf32>
    %67 = arith.addf %65, %66 : vector<1x8xf32>
    %68 = vector.extract_strided_slice %19 {offsets = [0, 64], sizes = [1, 8], strides = [1, 1]} : vector<1x128xf32> to vector<1x8xf32>
    %69 = arith.addf %67, %68 : vector<1x8xf32>
    %70 = vector.extract_strided_slice %19 {offsets = [0, 72], sizes = [1, 8], strides = [1, 1]} : vector<1x128xf32> to vector<1x8xf32>
    %71 = arith.addf %69, %70 : vector<1x8xf32>
    %72 = vector.extract_strided_slice %19 {offsets = [0, 80], sizes = [1, 8], strides = [1, 1]} : vector<1x128xf32> to vector<1x8xf32>
    %73 = arith.addf %71, %72 : vector<1x8xf32>
    %74 = vector.extract_strided_slice %19 {offsets = [0, 88], sizes = [1, 8], strides = [1, 1]} : vector<1x128xf32> to vector<1x8xf32>
    %75 = arith.addf %73, %74 : vector<1x8xf32>
    %76 = vector.extract_strided_slice %19 {offsets = [0, 96], sizes = [1, 8], strides = [1, 1]} : vector<1x128xf32> to vector<1x8xf32>
    %77 = arith.addf %75, %76 : vector<1x8xf32>
    %78 = vector.extract_strided_slice %19 {offsets = [0, 104], sizes = [1, 8], strides = [1, 1]} : vector<1x128xf32> to vector<1x8xf32>
    %79 = arith.addf %77, %78 : vector<1x8xf32>
    %80 = vector.extract_strided_slice %19 {offsets = [0, 112], sizes = [1, 8], strides = [1, 1]} : vector<1x128xf32> to vector<1x8xf32>
    %81 = arith.addf %79, %80 : vector<1x8xf32>
    %82 = vector.extract_strided_slice %19 {offsets = [0, 120], sizes = [1, 8], strides = [1, 1]} : vector<1x128xf32> to vector<1x8xf32>
    %83 = arith.addf %81, %82 : vector<1x8xf32>
    %cst_31 = arith.constant 0.001953125 : f32
    %84 = vector.broadcast %cst_31 : f32 to vector<1x8xf32>
    %85 = arith.mulf %83, %84 : vector<1x8xf32>
    %86 = arith.mulf %52, %52 : vector<1x8xf32>
    %87 = arith.subf %85, %86 : vector<1x8xf32>
    %cst_32 = arith.constant 0.000000e+00 : f32
    %88 = vector.broadcast %cst_32 : f32 to vector<1x8xf32>
    %89 = arith.maximumf %87, %88 : vector<1x8xf32>
    %cst_33 = arith.constant 9.99999974E-6 : f32
    %90 = vector.broadcast %cst_33 : f32 to vector<1x8xf32>
    %91 = arith.addf %89, %90 : vector<1x8xf32>
    %92 = math.rsqrt %91 : vector<1x8xf32>
    %93 = arith.mulf %13, %92 : vector<1x8xf32>
    %94 = arith.mulf %52, %93 : vector<1x8xf32>
    %95 = arith.subf %14, %94 : vector<1x8xf32>
    %96 = tpu.concatenate %93, %93, %93, %93, %93, %93, %93, %93, %93, %93, %93, %93, %93, %93, %93, %93 in 1 : vector<1x8xf32>, vector<1x8xf32>, vector<1x8xf32>, vector<1x8xf32>, vector<1x8xf32>, vector<1x8xf32>, vector<1x8xf32>, vector<1x8xf32>, vector<1x8xf32>, vector<1x8xf32>, vector<1x8xf32>, vector<1x8xf32>, vector<1x8xf32>, vector<1x8xf32>, vector<1x8xf32>, vector<1x8xf32> -> vector<1x128xf32>
    %97 = tpu.concatenate %95, %95, %95, %95, %95, %95, %95, %95, %95, %95, %95, %95, %95, %95, %95, %95 in 1 : vector<1x8xf32>, vector<1x8xf32>, vector<1x8xf32>, vector<1x8xf32>, vector<1x8xf32>, vector<1x8xf32>, vector<1x8xf32>, vector<1x8xf32>, vector<1x8xf32>, vector<1x8xf32>, vector<1x8xf32>, vector<1x8xf32>, vector<1x8xf32>, vector<1x8xf32>, vector<1x8xf32>, vector<1x8xf32> -> vector<1x128xf32>
    %98 = vector.broadcast %96 : vector<1x128xf32> to vector<32x128xf32>
    %99 = arith.mulf %12, %98 : vector<32x128xf32>
    %100 = vector.broadcast %97 : vector<1x128xf32> to vector<32x128xf32>
    %101 = arith.addf %99, %100 : vector<32x128xf32>
    %cst_34 = arith.constant 0.000000e+00 : f32
    %102 = vector.broadcast %cst_34 : f32 to vector<32x128xf32>
    %103 = arith.maximumf %101, %102 : vector<32x128xf32>
    %104 = arith.truncf %103 : vector<32x128xf32> to vector<32x128xbf16>
    %cst_35 = arith.constant 0.000000e+00 : bf16
    %105 = vector.broadcast %cst_35 : bf16 to vector<2x1x144xbf16>
    %c0_36 = arith.constant 0 : index
    %c0_37 = arith.constant 0 : index
    %c0_38 = arith.constant 0 : index
    %106 = vector.load %arg5[%c0_36, %c0_37, %c0_38] : memref<2x18x144xbf16, #tpu.memory_space<vmem>>, vector<2x1x144xbf16>
    tpu.vector_store %arg5[%c0_36, %c0_37, %c0_38], %105 {strides = array<i32>} : memref<2x18x144xbf16, #tpu.memory_space<vmem>>, vector<2x1x144xbf16>,
    %cst_39 = arith.constant 0.000000e+00 : bf16
    %107 = vector.broadcast %cst_39 : bf16 to vector<2x1x144xbf16>
    %c0_40 = arith.constant 0 : index
    %c17 = arith.constant 17 : index
    %c0_41 = arith.constant 0 : index
    %108 = vector.load %arg5[%c0_40, %c17, %c0_41] : memref<2x18x144xbf16, #tpu.memory_space<vmem>>, vector<2x1x144xbf16>
    tpu.vector_store %arg5[%c0_40, %c17, %c0_41], %107 {strides = array<i32>} : memref<2x18x144xbf16, #tpu.memory_space<vmem>>, vector<2x1x144xbf16>,
    %cst_42 = arith.constant 0.000000e+00 : bf16
    %109 = vector.broadcast %cst_42 : bf16 to vector<2x18x8xbf16>
    %c0_43 = arith.constant 0 : index
    %c0_44 = arith.constant 0 : index
    %c0_45 = arith.constant 0 : index
    %110 = vector.load %arg5[%c0_43, %c0_44, %c0_45] : memref<2x18x144xbf16, #tpu.memory_space<vmem>>, vector<2x18x8xbf16>
    tpu.vector_store %arg5[%c0_43, %c0_44, %c0_45], %109 {strides = array<i32>} : memref<2x18x144xbf16, #tpu.memory_space<vmem>>, vector<2x18x8xbf16>,
    %cst_46 = arith.constant 0.000000e+00 : bf16
    %111 = vector.broadcast %cst_46 : bf16 to vector<2x18x8xbf16>
    %c0_47 = arith.constant 0 : index
    %c0_48 = arith.constant 0 : index
    %c136 = arith.constant 136 : index
    %112 = vector.load %arg5[%c0_47, %c0_48, %c136] : memref<2x18x144xbf16, #tpu.memory_space<vmem>>, vector<2x18x8xbf16>
    tpu.vector_store %arg5[%c0_47, %c0_48, %c136], %111 {strides = array<i32>} : memref<2x18x144xbf16, #tpu.memory_space<vmem>>, vector<2x18x8xbf16>,
    %113 = vector.shape_cast %104 : vector<32x128xbf16> to vector<2x16x128xbf16>
    %c0_49 = arith.constant 0 : index
    %c1_50 = arith.constant 1 : index
    %c8_51 = arith.constant 8 : index
    %114 = vector.load %arg5[%c0_49, %c1_50, %c8_51] : memref<2x18x144xbf16, #tpu.memory_space<vmem>>, vector<2x16x128xbf16>
    tpu.vector_store %arg5[%c0_49, %c1_50, %c8_51], %113 {strides = array<i32>} : memref<2x18x144xbf16, #tpu.memory_space<vmem>>, vector<2x16x128xbf16>,
    %c0_52 = arith.constant 0 : index
    %c0_53 = arith.constant 0 : index
    %c0_54 = arith.constant 0 : index
    %115 = vector.load %arg5[%c0_52, %c0_53, %c0_54] : memref<2x18x144xbf16, #tpu.memory_space<vmem>>, vector<2x16x128xbf16>
    %c0_55 = arith.constant 0 : index
    %c0_56 = arith.constant 0 : index
    %c8_57 = arith.constant 8 : index
    %116 = vector.load %arg5[%c0_55, %c0_56, %c8_57] : memref<2x18x144xbf16, #tpu.memory_space<vmem>>, vector<2x16x128xbf16>
    %c0_58 = arith.constant 0 : index
    %c0_59 = arith.constant 0 : index
    %c16 = arith.constant 16 : index
    %117 = vector.load %arg5[%c0_58, %c0_59, %c16] : memref<2x18x144xbf16, #tpu.memory_space<vmem>>, vector<2x16x128xbf16>
    %c0_60 = arith.constant 0 : index
    %c1_61 = arith.constant 1 : index
    %c0_62 = arith.constant 0 : index
    %118 = vector.load %arg5[%c0_60, %c1_61, %c0_62] : memref<2x18x144xbf16, #tpu.memory_space<vmem>>, vector<2x16x128xbf16>
    %c0_63 = arith.constant 0 : index
    %c1_64 = arith.constant 1 : index
    %c8_65 = arith.constant 8 : index
    %119 = vector.load %arg5[%c0_63, %c1_64, %c8_65] : memref<2x18x144xbf16, #tpu.memory_space<vmem>>, vector<2x16x128xbf16>
    %c0_66 = arith.constant 0 : index
    %c1_67 = arith.constant 1 : index
    %c16_68 = arith.constant 16 : index
    %120 = vector.load %arg5[%c0_66, %c1_67, %c16_68] : memref<2x18x144xbf16, #tpu.memory_space<vmem>>, vector<2x16x128xbf16>
    %c0_69 = arith.constant 0 : index
    %c2_70 = arith.constant 2 : index
    %c0_71 = arith.constant 0 : index
    %121 = vector.load %arg5[%c0_69, %c2_70, %c0_71] : memref<2x18x144xbf16, #tpu.memory_space<vmem>>, vector<2x16x128xbf16>
    %c0_72 = arith.constant 0 : index
    %c2_73 = arith.constant 2 : index
    %c8_74 = arith.constant 8 : index
    %122 = vector.load %arg5[%c0_72, %c2_73, %c8_74] : memref<2x18x144xbf16, #tpu.memory_space<vmem>>, vector<2x16x128xbf16>
    %c0_75 = arith.constant 0 : index
    %c2_76 = arith.constant 2 : index
    %c16_77 = arith.constant 16 : index
    %123 = vector.load %arg5[%c0_75, %c2_76, %c16_77] : memref<2x18x144xbf16, #tpu.memory_space<vmem>>, vector<2x16x128xbf16>
    %124 = tpu.concatenate %115, %116, %117, %118, %119, %120, %121, %122, %123 in 2 : vector<2x16x128xbf16>, vector<2x16x128xbf16>, vector<2x16x128xbf16>, vector<2x16x128xbf16>, vector<2x16x128xbf16>, vector<2x16x128xbf16>, vector<2x16x128xbf16>, vector<2x16x128xbf16>, vector<2x16x128xbf16> -> vector<2x16x1152xbf16>
    %125 = vector.shape_cast %124 : vector<2x16x1152xbf16> to vector<32x1152xbf16>
    %c0_78 = arith.constant 0 : index
    %c0_79 = arith.constant 0 : index
    %126 = vector.load %arg2[%c0_78, %c0_79] : memref<1152x128xbf16, #tpu.memory_space<vmem>>, vector<1152x128xbf16>
    %cst_80 = arith.constant dense<0.000000e+00> : vector<32x128xf32>
    %127 = tpu.matmul %125, %126, %cst_80 {dimension_numbers = #tpu.dot_dimension_numbers<[1], [0], [0], [1], [0, 0, 1, 1], [], []>} : vector<32x1152xbf16>, vector<1152x128xbf16>, vector<32x128xf32> -> vector<32x128xf32>
    %c2_81 = arith.constant 2 : index
    %c0_82 = arith.constant 0 : index
    %128 = vector.load %arg3[%c2_81, %c0_82] : memref<4x8xf32, #tpu.memory_space<vmem>>, vector<1x8xf32>
    %c3 = arith.constant 3 : index
    %c0_83 = arith.constant 0 : index
    %129 = vector.load %arg3[%c3, %c0_83] : memref<4x8xf32, #tpu.memory_space<vmem>>, vector<1x8xf32>
    %cst_84 = arith.constant dense<0.000000e+00> : vector<128xf32>
    %130 = vector.multi_reduction <add>, %127, %cst_84 [0] : vector<32x128xf32> to vector<128xf32>
    %131 = vector.shape_cast %130 : vector<128xf32> to vector<1x128xf32>
    %132 = arith.mulf %127, %127 : vector<32x128xf32>
    %cst_85 = arith.constant dense<0.000000e+00> : vector<128xf32>
    %133 = vector.multi_reduction <add>, %132, %cst_85 [0] : vector<32x128xf32> to vector<128xf32>
    %134 = vector.shape_cast %133 : vector<128xf32> to vector<1x128xf32>
    %135 = vector.extract_strided_slice %131 {offsets = [0, 0], sizes = [1, 8], strides = [1, 1]} : vector<1x128xf32> to vector<1x8xf32>
    %136 = vector.extract_strided_slice %131 {offsets = [0, 8], sizes = [1, 8], strides = [1, 1]} : vector<1x128xf32> to vector<1x8xf32>
    %137 = arith.addf %135, %136 : vector<1x8xf32>
    %138 = vector.extract_strided_slice %131 {offsets = [0, 16], sizes = [1, 8], strides = [1, 1]} : vector<1x128xf32> to vector<1x8xf32>
    %139 = arith.addf %137, %138 : vector<1x8xf32>
    %140 = vector.extract_strided_slice %131 {offsets = [0, 24], sizes = [1, 8], strides = [1, 1]} : vector<1x128xf32> to vector<1x8xf32>
    %141 = arith.addf %139, %140 : vector<1x8xf32>
    %142 = vector.extract_strided_slice %131 {offsets = [0, 32], sizes = [1, 8], strides = [1, 1]} : vector<1x128xf32> to vector<1x8xf32>
    %143 = arith.addf %141, %142 : vector<1x8xf32>
    %144 = vector.extract_strided_slice %131 {offsets = [0, 40], sizes = [1, 8], strides = [1, 1]} : vector<1x128xf32> to vector<1x8xf32>
    %145 = arith.addf %143, %144 : vector<1x8xf32>
    %146 = vector.extract_strided_slice %131 {offsets = [0, 48], sizes = [1, 8], strides = [1, 1]} : vector<1x128xf32> to vector<1x8xf32>
    %147 = arith.addf %145, %146 : vector<1x8xf32>
    %148 = vector.extract_strided_slice %131 {offsets = [0, 56], sizes = [1, 8], strides = [1, 1]} : vector<1x128xf32> to vector<1x8xf32>
    %149 = arith.addf %147, %148 : vector<1x8xf32>
    %150 = vector.extract_strided_slice %131 {offsets = [0, 64], sizes = [1, 8], strides = [1, 1]} : vector<1x128xf32> to vector<1x8xf32>
    %151 = arith.addf %149, %150 : vector<1x8xf32>
    %152 = vector.extract_strided_slice %131 {offsets = [0, 72], sizes = [1, 8], strides = [1, 1]} : vector<1x128xf32> to vector<1x8xf32>
    %153 = arith.addf %151, %152 : vector<1x8xf32>
    %154 = vector.extract_strided_slice %131 {offsets = [0, 80], sizes = [1, 8], strides = [1, 1]} : vector<1x128xf32> to vector<1x8xf32>
    %155 = arith.addf %153, %154 : vector<1x8xf32>
    %156 = vector.extract_strided_slice %131 {offsets = [0, 88], sizes = [1, 8], strides = [1, 1]} : vector<1x128xf32> to vector<1x8xf32>
    %157 = arith.addf %155, %156 : vector<1x8xf32>
    %158 = vector.extract_strided_slice %131 {offsets = [0, 96], sizes = [1, 8], strides = [1, 1]} : vector<1x128xf32> to vector<1x8xf32>
    %159 = arith.addf %157, %158 : vector<1x8xf32>
    %160 = vector.extract_strided_slice %131 {offsets = [0, 104], sizes = [1, 8], strides = [1, 1]} : vector<1x128xf32> to vector<1x8xf32>
    %161 = arith.addf %159, %160 : vector<1x8xf32>
    %162 = vector.extract_strided_slice %131 {offsets = [0, 112], sizes = [1, 8], strides = [1, 1]} : vector<1x128xf32> to vector<1x8xf32>
    %163 = arith.addf %161, %162 : vector<1x8xf32>
    %164 = vector.extract_strided_slice %131 {offsets = [0, 120], sizes = [1, 8], strides = [1, 1]} : vector<1x128xf32> to vector<1x8xf32>
    %165 = arith.addf %163, %164 : vector<1x8xf32>
    %cst_86 = arith.constant 0.001953125 : f32
    %166 = vector.broadcast %cst_86 : f32 to vector<1x8xf32>
    %167 = arith.mulf %165, %166 : vector<1x8xf32>
    %168 = vector.extract_strided_slice %134 {offsets = [0, 0], sizes = [1, 8], strides = [1, 1]} : vector<1x128xf32> to vector<1x8xf32>
    %169 = vector.extract_strided_slice %134 {offsets = [0, 8], sizes = [1, 8], strides = [1, 1]} : vector<1x128xf32> to vector<1x8xf32>
    %170 = arith.addf %168, %169 : vector<1x8xf32>
    %171 = vector.extract_strided_slice %134 {offsets = [0, 16], sizes = [1, 8], strides = [1, 1]} : vector<1x128xf32> to vector<1x8xf32>
    %172 = arith.addf %170, %171 : vector<1x8xf32>
    %173 = vector.extract_strided_slice %134 {offsets = [0, 24], sizes = [1, 8], strides = [1, 1]} : vector<1x128xf32> to vector<1x8xf32>
    %174 = arith.addf %172, %173 : vector<1x8xf32>
    %175 = vector.extract_strided_slice %134 {offsets = [0, 32], sizes = [1, 8], strides = [1, 1]} : vector<1x128xf32> to vector<1x8xf32>
    %176 = arith.addf %174, %175 : vector<1x8xf32>
    %177 = vector.extract_strided_slice %134 {offsets = [0, 40], sizes = [1, 8], strides = [1, 1]} : vector<1x128xf32> to vector<1x8xf32>
    %178 = arith.addf %176, %177 : vector<1x8xf32>
    %179 = vector.extract_strided_slice %134 {offsets = [0, 48], sizes = [1, 8], strides = [1, 1]} : vector<1x128xf32> to vector<1x8xf32>
    %180 = arith.addf %178, %179 : vector<1x8xf32>
    %181 = vector.extract_strided_slice %134 {offsets = [0, 56], sizes = [1, 8], strides = [1, 1]} : vector<1x128xf32> to vector<1x8xf32>
    %182 = arith.addf %180, %181 : vector<1x8xf32>
    %183 = vector.extract_strided_slice %134 {offsets = [0, 64], sizes = [1, 8], strides = [1, 1]} : vector<1x128xf32> to vector<1x8xf32>
    %184 = arith.addf %182, %183 : vector<1x8xf32>
    %185 = vector.extract_strided_slice %134 {offsets = [0, 72], sizes = [1, 8], strides = [1, 1]} : vector<1x128xf32> to vector<1x8xf32>
    %186 = arith.addf %184, %185 : vector<1x8xf32>
    %187 = vector.extract_strided_slice %134 {offsets = [0, 80], sizes = [1, 8], strides = [1, 1]} : vector<1x128xf32> to vector<1x8xf32>
    %188 = arith.addf %186, %187 : vector<1x8xf32>
    %189 = vector.extract_strided_slice %134 {offsets = [0, 88], sizes = [1, 8], strides = [1, 1]} : vector<1x128xf32> to vector<1x8xf32>
    %190 = arith.addf %188, %189 : vector<1x8xf32>
    %191 = vector.extract_strided_slice %134 {offsets = [0, 96], sizes = [1, 8], strides = [1, 1]} : vector<1x128xf32> to vector<1x8xf32>
    %192 = arith.addf %190, %191 : vector<1x8xf32>
    %193 = vector.extract_strided_slice %134 {offsets = [0, 104], sizes = [1, 8], strides = [1, 1]} : vector<1x128xf32> to vector<1x8xf32>
    %194 = arith.addf %192, %193 : vector<1x8xf32>
    %195 = vector.extract_strided_slice %134 {offsets = [0, 112], sizes = [1, 8], strides = [1, 1]} : vector<1x128xf32> to vector<1x8xf32>
    %196 = arith.addf %194, %195 : vector<1x8xf32>
    %197 = vector.extract_strided_slice %134 {offsets = [0, 120], sizes = [1, 8], strides = [1, 1]} : vector<1x128xf32> to vector<1x8xf32>
    %198 = arith.addf %196, %197 : vector<1x8xf32>
    %cst_87 = arith.constant 0.001953125 : f32
    %199 = vector.broadcast %cst_87 : f32 to vector<1x8xf32>
    %200 = arith.mulf %198, %199 : vector<1x8xf32>
    %201 = arith.mulf %167, %167 : vector<1x8xf32>
    %202 = arith.subf %200, %201 : vector<1x8xf32>
    %cst_88 = arith.constant 0.000000e+00 : f32
    %203 = vector.broadcast %cst_88 : f32 to vector<1x8xf32>
    %204 = arith.maximumf %202, %203 : vector<1x8xf32>
    %cst_89 = arith.constant 9.99999974E-6 : f32
    %205 = vector.broadcast %cst_89 : f32 to vector<1x8xf32>
    %206 = arith.addf %204, %205 : vector<1x8xf32>
    %207 = math.rsqrt %206 : vector<1x8xf32>
    %208 = arith.mulf %128, %207 : vector<1x8xf32>
    %209 = arith.mulf %167, %208 : vector<1x8xf32>
    %210 = arith.subf %129, %209 : vector<1x8xf32>
    %211 = tpu.concatenate %208, %208, %208, %208, %208, %208, %208, %208, %208, %208, %208, %208, %208, %208, %208, %208 in 1 : vector<1x8xf32>, vector<1x8xf32>, vector<1x8xf32>, vector<1x8xf32>, vector<1x8xf32>, vector<1x8xf32>, vector<1x8xf32>, vector<1x8xf32>, vector<1x8xf32>, vector<1x8xf32>, vector<1x8xf32>, vector<1x8xf32>, vector<1x8xf32>, vector<1x8xf32>, vector<1x8xf32>, vector<1x8xf32> -> vector<1x128xf32>
    %212 = tpu.concatenate %210, %210, %210, %210, %210, %210, %210, %210, %210, %210, %210, %210, %210, %210, %210, %210 in 1 : vector<1x8xf32>, vector<1x8xf32>, vector<1x8xf32>, vector<1x8xf32>, vector<1x8xf32>, vector<1x8xf32>, vector<1x8xf32>, vector<1x8xf32>, vector<1x8xf32>, vector<1x8xf32>, vector<1x8xf32>, vector<1x8xf32>, vector<1x8xf32>, vector<1x8xf32>, vector<1x8xf32>, vector<1x8xf32> -> vector<1x128xf32>
    %213 = vector.broadcast %211 : vector<1x128xf32> to vector<32x128xf32>
    %214 = arith.mulf %127, %213 : vector<32x128xf32>
    %215 = vector.broadcast %212 : vector<1x128xf32> to vector<32x128xf32>
    %216 = arith.addf %214, %215 : vector<32x128xf32>
    %cst_90 = arith.constant 0.000000e+00 : f32
    %217 = vector.broadcast %cst_90 : f32 to vector<32x128xf32>
    %218 = arith.maximumf %216, %217 : vector<32x128xf32>
    %219 = vector.shape_cast %218 : vector<32x128xf32> to vector<2x16x128xf32>
    %c0_91 = arith.constant 0 : index
    %c0_92 = arith.constant 0 : index
    %c0_93 = arith.constant 0 : index
    %220 = vector.load %arg4[%c0_91, %c0_92, %c0_93] : memref<2x16x128xf32, #tpu.memory_space<vmem>>, vector<2x16x128xf32>
    tpu.vector_store %arg4[%c0_91, %c0_92, %c0_93], %219 {strides = array<i32>} : memref<2x16x128xf32, #tpu.memory_space<vmem>>, vector<2x16x128xf32>,
    return
  }
}

</mosaic_0001>

<bundles_post_ra>
// kernel: tpu_custom_call.1
= control target key start
LH: loop header
LB: loop body
LE: loop exit
PB: predicated region body
PF: predicated region fallthrough
CT: control target
= control target key end

     0   :  { %9 = vsyncpa [#allocation4], 0  ;;  %s3701_s0 = inlined_call_operand.vmem [shape: bf16[2,18,72], index: 0, kind: input, shape index: {}]   ;;  %s3702_s1 = inlined_call_operand.hbm [shape: bf16[576,128], index: 1, kind: input, shape index: {}]   ;;  %s3703_s2 = inlined_call_operand.hbm [shape: bf16[1152,128], index: 2, kind: input, shape index: {}]   ;;  %s3704_s3 = inlined_call_operand.vmem [shape: f32[4,8], index: 3, kind: input, shape index: {}]   ;;  %s3705_s4 = inlined_call_operand.hbm [shape: f32[2,16,128], index: 4, kind: output, shape index: {}]  }
   0x1   :  { %10 = vsyncpa [#allocation7], 0 }
   0x2   :  { %11 = vsyncpa [#allocation5], 0  ;;  %s3037_s15 = smov [#allocation3]   ;;  %s2965_s19 = scalar_lea.hbm %s3702_s1, 4608 }
   0x3   :  { %s19_s16 = sshll.u32 %s3037_s15, 4  ;;  %p2966_p0 = scmp.ne.s32.totalorder %s3702_s1, %s2965_s19  ;;  %s20_s16 = int_to_ptr.vmem [resolvable:$true] %s19_s16 }
   0x4   :  { %p2969_p1 = scmp.lt.u32.totalorder %s2965_s19, %s3702_s1 }
   0x6   :  { %p2971_p2 = pnand %p2969_p1, %p2966_p0 }
   0x8   :  { %2974 = shalt.err (!%p2971_p2)
}
   0x9   :  { %s2975_s24 = scalar_lea.vmem %s20_s16, 4608  ;;  %p2980_p4 = scmp.lt.s32.totalorder %s20_s16, %s20_s16 }
   0xa   :  { %p2976_p3 = scmp.ne.s32.totalorder %s20_s16, %s2975_s24  ;;  %p2981_p5 = scmp.lt.s32.totalorder %s2975_s24, %s2975_s24 }
   0xc   :  { %p2982_p6 = por %p2981_p5, %p2980_p4 }
   0xe   :  { %p2983_p7 = pnand %p2982_p6, %p2976_p3 }
  0x10   :  { %2986 = shalt.err (!%p2983_p7)
}
  0x11   :  { %s3038_s25 = smov 64   ;;  %s3039_s26 = smov 4  }
  0x12   :  { %25 = dma.hbm_to_vmem [thread:$0]  %s3702_s1, 4608, %s20_s16, [#allocation4], %s3038_s25, %s3038_s25, %s3039_s26  }
  0x13   :  { %s3040_s29 = smov [#allocation6]   ;;  %s2987_s7 = scalar_lea.hbm %s3703_s2, 9216 }
  0x14   :  { %s31_s30 = sshll.u32 %s3040_s29, 4  ;;  %p2988_p8 = scmp.ne.s32.totalorder %s3703_s2, %s2987_s7  ;;  %s32_s30 = int_to_ptr.vmem [resolvable:$true] %s31_s30 }
  0x15   :  { %p2991_p9 = scmp.lt.u32.totalorder %s2987_s7, %s3703_s2 }
  0x17   :  { %p2993_p10 = pnand %p2991_p9, %p2988_p8 }
  0x19   :  { %2996 = shalt.err (!%p2993_p10)
}
  0x1a   :  { %s2997_s12 = scalar_lea.vmem %s32_s30, 9216  ;;  %p3002_p12 = scmp.lt.s32.totalorder %s32_s30, %s32_s30 }
  0x1b   :  { %p2998_p11 = scmp.ne.s32.totalorder %s32_s30, %s2997_s12  ;;  %p3003_p13 = scmp.lt.s32.totalorder %s2997_s12, %s2997_s12 }
  0x1d   :  { %p3004_p0 = por %p3003_p13, %p3002_p12 }
  0x1f   :  { %p3005_p1 = pnand %p3004_p0, %p2998_p11 }
  0x21   :  { %3008 = shalt.err (!%p3005_p1)
}
  0x22   :  { %37 = dma.hbm_to_vmem [thread:$0]  %s3703_s2, 9216, %s32_s30, [#allocation7], %s3038_s25, %s3038_s25, %s3039_s26  }
  0x23   :  { %3031 = dma.done.wait [#allocation4], 4608  }
  0x24   :  { %3032 = vsyncadd [#allocation4], 4294962688 }
  0x25   :  { %3033 = dma.done.wait [#allocation7], 9216  }
  0x26   :  { %3034 = vsyncadd [#allocation7], 4294958080  ;;  %vm3707_vm0 = vsmask.f32 7424  ;;  %v47_v0 = vld [vmem:[%s3701_s0] sm:$0xf] }
  0x27   :  { %v48_v1 = vld [vmem:[%s3701_s0 + $0x4] sm:$0xf]  ;;  %v49_v2 = vld [vmem:[%s3701_s0 + $0xc] sm:$0xf]  ;;  %v50_v4 = vld [vmem:[%s3701_s0 + $0x10] sm:$0xf] }
  0x28   :  { %v3122_v3 = vcombine.low %v47_v0, %v48_v1  ;;  %v53_v5 = vld [vmem:[%s3701_s0] sm:$0xe]  ;;  %v3130_v6 = vcombine.low %v49_v2, %v50_v4  ;;  %v2835_v7 = vld [vmem:[%s3701_s0 + $0x8] ss:$0 sps:$4 sm:$0x11]   ;;  %s3041_s26 = smov 60  }
  0x29   :  { %v2456_v8 = vcombine.low %v53_v5, %v48_v1  ;;  %v2839_v9 = vld [vmem:[#allocation3 + $0x40] sm:$0xff]   ;;  %s3042_s27 = smov 120   ;;  %v2837_v12 = vld [vmem:[%s3701_s0 + $0x14] ss:$0 sps:$4 sm:$0x11]   ;;  %v88_v14 = vshll.u32 %v2835_v7, 16 }
  0x2a   :  { %65 = vrot.lane.b32.xlu1 %v3122_v3, %s3041_s26  ;;  %69 = vrot.lane.b32.xlu0 %v3122_v3, %s3042_s27  ;;  %v81_v10 = vshrl.u32 %v3122_v3, 16  ;;  %v83_v11 = vshll.u32 %v3122_v3, 16  ;;  %v2840_v13 = vld [vmem:[#allocation3] sm:$0xff]   ;;  %v124_v16 = vrot.slane %v2835_v7, 1  ;;  %vm3706_vm1 = vcmask 1046528   ;;  %v2841_v20 = vld [vmem:[#allocation3 + $0x48] sm:$0xff]  }
  0x2b   :  { %v123_v15 = vrot.slane %v2456_v8, 1  ;;  %v54_v17 = vld [vmem:[%s3701_s0 + $0xc] sm:$0xe]  ;;  %2594 = vmatprep.subr.bf16.mxu0 %v2839_v9  ;;  %v95_v19 = vshll.u32 %v3130_v6, 16  ;;  %v90_v21 = vrot.slane %v88_v14, 1  ;;  %v93_v23 = vshrl.u32 %v3130_v6, 16 }
  0x2c   :  { %v85_v18 = vrot.slane %v83_v11, 1  ;;  %2595 = vmatpush3.bf16.msra.mxu0 %v2840_v13  ;;  %v100_v25 = vshll.u32 %v2837_v12, 16  ;;  %v2842_v26 = vld [vmem:[#allocation3 + $0x8] sm:$0xff]   ;;  %v2457_v28 = vcombine.low %v54_v17, %v50_v4  ;;  %v127_v30 = vrot.slane %v2837_v12, 1  ;;  %v2843_v31 = vld [vmem:[#allocation3 + $0x50] sm:$0xff]   ;;  %v2845_v36 = vld [vmem:[#allocation3 + $0xc0] sm:$0xff]  }
  0x2d   :  { %v97_v24 = vrot.slane %v95_v19, 1  ;;  %2596 = vmatprep.subr.bf16.mxu0 %v2841_v20  ;;  %v3152_v27 = vsel %vm3706_vm1, %v123_v15, %v124_v16  ;;  %v2844_v34 = vld [vmem:[#allocation3 + $0x10] sm:$0xff]   ;;  %v2846_v37 = vld [vmem:[#allocation3 + $0x58] sm:$0xff]   ;;  %2622 = vmatprep.subr.bf16.mxu1 %v2845_v36  ;;  %v2847_v38 = vld [vmem:[#allocation3 + $0x80] sm:$0xff]   ;;  %s3043_s0 = smov 124   ;;  %s3044_s6 = smov 56  }
  0x2e   :  { %71 = vrot.lane.b32.xlu1 %v3130_v6, %s3042_s27  ;;  %v86_v22 = vor.u32 %v85_v18, %v81_v10  ;;  %v102_v33 = vrot.slane %v100_v25, 1  ;;  %v126_v35 = vrot.slane %v2457_v28, 1  ;;  %v2848_v40 = vld [vmem:[#allocation3 + $0x18] sm:$0xff]   ;;  %2623 = vmatpush3.bf16.msra.mxu1 %v2847_v38  ;;  %v2849_v42 = vld [vmem:[#allocation3 + $0xc8] sm:$0xff]   ;;  %v2850_v43 = vld [vmem:[#allocation3 + $0x60] sm:$0xff]   ;;  %vm3723_vm2 = vcmask 523264  }
  0x2f   :  { %v98_v32 = vor.u32 %v97_v24, %v93_v23  ;;  %2624 = vmatprep.subr.bf16.mxu1 %v2849_v42  ;;  %v2851_v44 = vld [vmem:[#allocation3 + $0x88] sm:$0xff]   ;;  %v2852_v45 = vld [vmem:[#allocation3 + $0x20] sm:$0xff]   ;;  %v2853_v46 = vld [vmem:[#allocation3 + $0xd0] sm:$0xff]   ;;  %s3045_s7 = smov 112   ;;  %s3046_s8 = smov 104   ;;  %vm923_vm3 = vcmask 1040384  }
  0x30   :  { %v91_v29 = vsel %vm3707_vm0, %v86_v22, %v90_v21  ;;  %2597 = vmatpush3.bf16.msra.mxu0 %v2842_v26  ;;  %v3163_v41 = vsel %vm3706_vm1, %v126_v35, %v127_v30  ;;  %v2854_v47 = vld [vmem:[#allocation3 + $0x68] sm:$0xff]   ;;  %v2855_v48 = vld [vmem:[#allocation3 + $0x90] sm:$0xff]   ;;  %v2857_v50 = vld [vmem:[#allocation3 + $0xd8] sm:$0xff]   ;;  %s3047_s9 = smov 96   ;;  %s3048_s10 = smov 88   ;;  %vm926_vm6 = vcmask 126980  }
  0x31   :  { %104 = vrot.lane.b32.xlu0 %v91_v29, %s3038_s25  ;;  %2598 = vmatprep.subr.bf16.mxu0 %v2843_v31  ;;  %v103_v39 = vsel %vm3707_vm0, %v98_v32, %v102_v33  ;;  %v2856_v49 = vld [vmem:[#allocation3 + $0x28] sm:$0xff]   ;;  %v2858_v51 = vld [vmem:[#allocation3 + $0x70] sm:$0xff]   ;;  %v2859_v52 = vld [vmem:[#allocation3 + $0x98] sm:$0xff]   ;;  %s3049_s11 = smov 80   ;;  %s3050_s12 = smov 72   ;;  %vm3715_vm12 = vcmask 60416  }
  0x32   :  { %129 = vrot.lane.b32.xlu1 %v3152_v27, %s3041_s26  ;;  %2625 = vmatpush3.bf16.msra.mxu1 %v2851_v44  ;;  %v2860_v53 = vld [vmem:[#allocation3 + $0x30] sm:$0xff]   ;;  %v2861_v54 = vld [vmem:[#allocation3 + $0xe0] sm:$0xff]   ;;  %v2862_v55 = vld [vmem:[#allocation3 + $0x78] sm:$0xff]   ;;  %s3051_s1 = smov 48   ;;  %s3052_s13 = smov 40   ;;  %vm3713_vm13 = vcmask 126016  }
  0x33   :  { %2626 = vmatprep.subr.bf16.mxu1 %v2853_v46  ;;  %v2863_v56 = vld [vmem:[#allocation3 + $0xa0] sm:$0xff]   ;;  %v2864_v57 = vld [vmem:[#allocation3 + $0x38] sm:$0xff]   ;;  %v2865_v58 = vld [vmem:[#allocation3 + $0xe8] sm:$0xff]   ;;  %s3053_s14 = smov 32   ;;  %s3054_s15 = smov 24   ;;  %vm3712_vm15 = vcmask 1043520  }
  0x34   :  { %2599 = vmatpush3.bf16.msra.mxu0 %v2844_v34  ;;  %v2866_v59 = vld [vmem:[#allocation3 + $0xa8] sm:$0xff]   ;;  %v2867_v60 = vld [vmem:[#allocation3 + $0x100] sm:$0xff]   ;;  %v2868_v61 = vld [vmem:[#allocation3 + $0xf0] sm:$0xff]   ;;  %s3055_s16 = smov 16   ;;  %s3056_s17 = smov 8   ;;  %vm3711_vm1 = vcmask 64516  }
  0x35   :  { %67 = vrot.lane.b32.xlu0 %v3130_v6, %s3041_s26  ;;  %2600 = vmatprep.subr.bf16.mxu0 %v2846_v37  ;;  %v2869_v62 = vld [vmem:[#allocation3 + $0xb0] sm:$0xff]   ;;  %v2871_v63 = vld [vmem:[#allocation3 + $0xf8] sm:$0xff]   ;;  %v2870_v9 = vld [vmem:[#allocation3 + $0x108] sm:$0xff]   ;;  %vm3709_vm4 = vsmask.f32 256 }
  0x36   :  { %108 = vrot.lane.b32.xlu1 %v91_v29, %s3043_s0  ;;  %2627 = vmatpush3.bf16.msra.mxu1 %v2855_v48  ;;  %v2872_v0 = vld [vmem:[#allocation3 + $0xb8] sm:$0xff]   ;;  %v2873_v14 = vld [vmem:[#allocation3 + $0x110] sm:$0xff]   ;;  %vm3311_vm5 = vmand %vm923_vm3, %vm3709_vm4  ;;  %vm3708_vm7 = vsmask.f32 4352  ;;  %vm936_vm9 = vsmask.f32 7938 }
  0x37   :  { %2628 = vmatprep.subr.bf16.mxu1 %v2857_v50  ;;  %v2874_v18 = vld [vmem:[#allocation3 + $0x118] sm:$0xff]   ;;  %vm3317_vm8 = vmand %vm926_vm6, %vm3708_vm7  ;;  %vm938_vm10 = vsmask.f32 7954  ;;  %vm950_vm7 = vcmask 57344   ;;  %vm958_vm4 = vcmask 122944  }
  0x38   :  { %2601 = vmatpush3.bf16.msra.mxu0 %v2848_v40  ;;  %vm3710_vm11 = vmor %vm3317_vm8, %vm3311_vm5 }
  0x39   :  { %106 = vrot.lane.b32.xlu0 %v103_v39, %s3038_s25  ;;  %2602 = vmatprep.subr.bf16.mxu0 %v2850_v43  ;;  %vm3331_vm14 = vmand %vm923_vm3, %vm936_vm9 }
  0x3a   :  { %131 = vrot.lane.b32.xlu1 %v3163_v41, %s3041_s26  ;;  %2629 = vmatpush3.bf16.msra.mxu1 %v2859_v52  ;;  %vm939_vm3 = vmand %vm926_vm6, %vm938_vm10 }
  0x3b   :  { %2630 = vmatprep.subr.bf16.mxu1 %v2861_v54  ;;  %vm940_vm0 = vmor %vm939_vm3, %vm3331_vm14  ;;  %vm819_vm14 = vcmask 326656   ;;  %vm821_vm3 = vcmask 392192  }
  0x3c   :  { %2603 = vmatpush3.bf16.msra.mxu0 %v2852_v45  ;;  %vm3359_vm6 = vmand %vm3711_vm1, %vm938_vm10  ;;  %vm3717_vm10 = vcmask 261120   ;;  %vm3722_vm1 = vcmask 588800  }
  0x3d   :  { %112 = vrot.lane.b32.xlu0 %v91_v29, %s3044_s6  ;;  %2604 = vmatprep.subr.bf16.mxu0 %v2854_v47 }
  0x3e   :  { %114 = vrot.lane.b32.xlu1 %v103_v39, %s3044_s6  ;;  %2631 = vmatpush3.bf16.msra.mxu1 %v2863_v56 }
  0x3f   :  { %2632 = vmatprep.subr.bf16.mxu1 %v2865_v58 }
  0x40   :  { %2605 = vmatpush3.bf16.msra.mxu0 %v2856_v49 }
  0x41   :  { %110 = vrot.lane.b32.xlu0 %v103_v39, %s3043_s0  ;;  %2606 = vmatprep.subr.bf16.mxu0 %v2858_v51 }
  0x42   :  { %135 = vrot.lane.b32.xlu1 %v3163_v41, %s3042_s27  ;;  %2633 = vmatpush3.bf16.msra.mxu1 %v2866_v59 }
  0x43   :  { %2634 = vmatprep.subr.bf16.mxu1 %v2868_v61 }
  0x44   :  { %2607 = vmatpush3.bf16.msra.mxu0 %v2860_v53 }
  0x45   :  { %133 = vrot.lane.b32.xlu0 %v3152_v27, %s3042_s27  ;;  %2608 = vmatprep.subr.bf16.mxu0 %v2862_v55 }
  0x46   :  { %2635 = vmatpush3.bf16.msra.mxu1 %v2869_v62 }
  0x47   :  { %2636 = vmatprep.subr.bf16.mxu1 %v2871_v63 }
  0x48   :  { %2609 = vmatpush3.bf16.msra.mxu0 %v2864_v57 }
  0x49   :  { %2778 = vmatprep.subr.bf16.mxu0 %v2867_v60 }
  0x4a   :  { %2637 = vmatpush3.bf16.msra.mxu1 %v2872_v0 }
  0x9c   :  { %v66_v1 = vpop.permute.xlu1 %65  ;;  %v70_v2 = vpop.permute.xlu0 %69 }
  0x9d   :  { %v139_v10 = vsel %vm3723_vm2, %v3122_v3, %v66_v1 }
  0xa0   :  { %v72_v4 = vpop.permute.xlu1 %71 }
  0xa3   :  { %v105_v5 = vpop.permute.xlu0 %104 }
  0xa4   :  { %v146_v7 = vsel %vm3723_vm2, %v70_v2, %v105_v5  ;;  %v130_v8 = vpop.permute.xlu1 %129 }
  0xa5   :  { %494 = vmatprep.mubr.bf16.mxu0 %v146_v7  ;;  %v162_v11 = vsel %vm3723_vm2, %v3152_v27, %v130_v8 }
  0xa6   :  { %495 = vmatmul.mubr.bf16.vlgmr.msra.gmra.mrb[0].mxu0 %v139_v10  ;;  %543 = vmatprep.mubr.bf16.mxu1 %v162_v11 }
  0xa7   :  { %v68_v12 = vpop.permute.xlu0 %67  ;;  %2779 = vmatpush3.bf16.msra.mxu0 %v2867_v60 }
  0xa8   :  { %v109_v13 = vpop.permute.xlu1 %108  ;;  %2780 = vmatprep.subr.bf16.mxu0 %v2870_v9  ;;  %v142_v3 = vsel %vm3723_vm2, %v3130_v6, %v68_v12 }
  0xab   :  { %v107_v15 = vpop.permute.xlu0 %106  ;;  %2781 = vmatpush3.bf16.msra.mxu0 %v2870_v9 }
  0xac   :  { %v150_v16 = vsel %vm3723_vm2, %v72_v4, %v107_v15  ;;  %v132_v17 = vpop.permute.xlu1 %131  ;;  %2782 = vmatprep.subr.bf16.mxu0 %v2873_v14 }
  0xad   :  { %502 = vmatprep.mubr.bf16.mxu0 %v150_v16  ;;  %v166_v20 = vsel %vm3723_vm2, %v3163_v41, %v132_v17 }
  0xae   :  { %503 = vmatmul.mubr.bf16.gmra.mrb[4].mxu0 %v142_v3 }
  0xaf   :  { %v113_v19 = vpop.permute.xlu0 %112  ;;  %2783 = vmatpush3.bf16.msra.mxu0 %v2873_v14 }
  0xb0   :  { %v154_v21 = vsel %vm3723_vm2, %v109_v13, %v113_v19  ;;  %v115_v22 = vpop.permute.xlu1 %114  ;;  %2784 = vmatprep.subr.bf16.mxu0 %v2874_v18 }
  0xb1   :  { %544 = vmatmul.mubr.bf16.vlgmr.msra.gmra.mrb[0].mxu1 %v154_v21 }
  0xb2   :  { %551 = vmatprep.mubr.bf16.mxu1 %v166_v20 }
  0xb3   :  { %v111_v23 = vpop.permute.xlu0 %110  ;;  %2785 = vmatpush3.bf16.msra.mxu0 %v2874_v18 }
  0xb4   :  { %v136_v24 = vpop.permute.xlu1 %135  ;;  %v158_v6 = vsel %vm3723_vm2, %v111_v23, %v115_v22 }
  0xb7   :  { %v134_v25 = vpop.permute.xlu0 %133 }
  0xb8   :  { %2786 = vmatprep.mubr.msk.bf16.mxu0 %vm3723_vm2, %v134_v25 }
  0xb9   :  { %552 = vmatmul.mubr.bf16.gmra.mrb[4].mxu1 %v158_v6  ;;  %2787 = vmatmul.mubr.msk.bf16.vlgmr.msra.gmra.mrb[8].mxu0 %vm3723_vm2, %v136_v24 }
 0x179   :  { %v2610_v26 = vpop.f32.mrb[0].mxu0 }
 0x17a   :  { %v2611_v27 = vpop.f32.mrb[1].mxu0 }
 0x17b   :  { %v2612_v28 = vadd.f32 %v2611_v27, %v2610_v26  ;;  %v2613_v29 = vpop.f32.mrb[2].mxu0 }
 0x17c   :  { %v2614_v30 = vpop.f32.mrb[3].mxu0 }
 0x17d   :  { %v2615_v31 = vadd.f32 %v2614_v30, %v2613_v29 }
 0x181   :  { %v2616_v32 = vpop.f32.mrb[4].mxu0 }
 0x182   :  { %v2617_v33 = vpop.f32.mrb[5].mxu0 }
 0x183   :  { %v2618_v34 = vadd.f32 %v2617_v33, %v2616_v32  ;;  %v2619_v35 = vpop.f32.mrb[6].mxu0 }
 0x184   :  { %v2620_v36 = vpop.f32.mrb[7].mxu0  ;;  %v2638_v37 = vpop.f32.mrb[0].mxu1 }
 0x185   :  { %v2621_v38 = vadd.f32 %v2620_v36, %v2619_v35  ;;  %v2639_v39 = vpop.f32.mrb[1].mxu1 }
 0x186   :  { %v2640_v40 = vadd.f32 %v2639_v39, %v2638_v37  ;;  %v2641_v41 = vpop.f32.mrb[2].mxu1 }
 0x187   :  { %v2642_v42 = vpop.f32.mrb[3].mxu1 }
 0x188   :  { %v2643_v43 = vadd.f32 %v2642_v42, %v2641_v41  ;;  %v546_v44 = vadd.f32 %v2640_v40, %v2612_v28 }
 0x18a   :  { %v549_v45 = vadd.f32 %v2643_v43, %v2615_v31 }
 0x18c   :  { %v2644_v46 = vpop.f32.mrb[4].mxu1  ;;  %v2788_v47 = vpop.f32.mrb[8].mxu0 }
 0x18d   :  { %v2645_v48 = vpop.f32.mrb[5].mxu1  ;;  %v594_v49 = vpop.f32.mrb[9].mxu0 }
 0x18e   :  { %v2646_v50 = vadd.f32 %v2645_v48, %v2644_v46  ;;  %v3189_v51 = vadd.f32 %v594_v49, %v546_v44  ;;  %v2647_v52 = vpop.f32.mrb[6].mxu1  ;;  %v2789_v53 = vpop.f32.mrb[10].mxu0 }
 0x18f   :  { %v2648_v54 = vpop.f32.mrb[7].mxu1  ;;  %v597_v55 = vpop.f32.mrb[11].mxu0 }
 0x190   :  { %v554_v56 = vadd.f32 %v2646_v50, %v2618_v34  ;;  %v2649_v57 = vadd.f32 %v2648_v54, %v2647_v52  ;;  %v3191_v58 = vadd.f32 %v597_v55, %v549_v45  ;;  %v620_v59 = vmul.f32 %v3189_v51, %v3189_v51 }
 0x192   :  { %v3195_v60 = vadd.f32 %v2788_v47, %v554_v56  ;;  %v557_v61 = vadd.f32 %v2649_v57, %v2621_v38  ;;  %v611_v62 = vadd.f32 %v3191_v58, %v3189_v51  ;;  %v621_v63 = vmul.f32 %v3191_v58, %v3191_v58 }
 0x194   :  { %v622_v0 = vmul.f32 %v3195_v60, %v3195_v60  ;;  %v3203_v1 = vadd.f32 %v2789_v53, %v557_v61  ;;  %v612_v2 = vadd.f32 %v611_v62, %v3195_v60  ;;  %v624_v4 = vadd.f32 %v621_v63, %v620_v59 }
 0x196   :  { %v623_v5 = vmul.f32 %v3203_v1, %v3203_v1  ;;  %v613_v7 = vadd.f32 %v612_v2, %v3203_v1  ;;  %v625_v8 = vadd.f32 %v624_v4, %v622_v0 }
 0x198   :  { %v614_v9 = vrot.slane %v613_v7, 4  ;;  %v626_v10 = vadd.f32 %v625_v8, %v623_v5 }
 0x19a   :  { %v615_v11 = vadd.f32 %v614_v9, %v613_v7  ;;  %v627_v12 = vrot.slane %v626_v10, 4 }
 0x19c   :  { %v616_v13 = vrot.slane %v615_v11, 2  ;;  %v628_v14 = vadd.f32 %v627_v12, %v626_v10 }
 0x19e   :  { %v617_v15 = vadd.f32 %v616_v13, %v615_v11  ;;  %v629_v16 = vrot.slane %v628_v14, 2 }
 0x1a0   :  { %v618_v17 = vrot.slane %v617_v15, 1  ;;  %v630_v18 = vadd.f32 %v629_v16, %v628_v14 }
 0x1a2   :  { %v619_v3 = vadd.f32 %v618_v17, %v617_v15  ;;  %v631_v19 = vrot.slane %v630_v18, 1 }
 0x1a4   :  { %638 = vrot.lane.b32.xlu1 %v619_v3, %s3045_s7  ;;  %634 = vrot.lane.b32.xlu0 %v619_v3, %s3042_s27  ;;  %v632_v20 = vadd.f32 %v631_v19, %v630_v18 }
 0x1a8   :  { %642 = vrot.lane.b32.xlu1 %v619_v3, %s3046_s8  ;;  %696 = vrot.lane.b32.xlu0 %v632_v20, %s3042_s27 }
 0x1ac   :  { %646 = vrot.lane.b32.xlu1 %v619_v3, %s3047_s9  ;;  %700 = vrot.lane.b32.xlu0 %v632_v20, %s3045_s7 }
 0x1b0   :  { %650 = vrot.lane.b32.xlu1 %v619_v3, %s3048_s10  ;;  %704 = vrot.lane.b32.xlu0 %v632_v20, %s3046_s8 }
 0x1b4   :  { %654 = vrot.lane.b32.xlu1 %v619_v3, %s3049_s11  ;;  %708 = vrot.lane.b32.xlu0 %v632_v20, %s3047_s9 }
 0x1b8   :  { %658 = vrot.lane.b32.xlu1 %v619_v3, %s3050_s12  ;;  %712 = vrot.lane.b32.xlu0 %v632_v20, %s3048_s10 }
 0x1bc   :  { %662 = vrot.lane.b32.xlu1 %v619_v3, %s3038_s25  ;;  %716 = vrot.lane.b32.xlu0 %v632_v20, %s3049_s11 }
 0x1c0   :  { %666 = vrot.lane.b32.xlu1 %v619_v3, %s3044_s6  ;;  %720 = vrot.lane.b32.xlu0 %v632_v20, %s3050_s12 }
 0x1c4   :  { %670 = vrot.lane.b32.xlu1 %v619_v3, %s3051_s1  ;;  %724 = vrot.lane.b32.xlu0 %v632_v20, %s3038_s25 }
 0x1c8   :  { %674 = vrot.lane.b32.xlu1 %v619_v3, %s3052_s13  ;;  %728 = vrot.lane.b32.xlu0 %v632_v20, %s3044_s6 }
 0x1cc   :  { %678 = vrot.lane.b32.xlu1 %v619_v3, %s3053_s14  ;;  %732 = vrot.lane.b32.xlu0 %v632_v20, %s3051_s1 }
 0x1d0   :  { %682 = vrot.lane.b32.xlu1 %v619_v3, %s3054_s15  ;;  %736 = vrot.lane.b32.xlu0 %v632_v20, %s3052_s13 }
 0x1d4   :  { %686 = vrot.lane.b32.xlu1 %v619_v3, %s3055_s16  ;;  %740 = vrot.lane.b32.xlu0 %v632_v20, %s3053_s14 }
 0x1d8   :  { %690 = vrot.lane.b32.xlu1 %v619_v3, %s3056_s17  ;;  %744 = vrot.lane.b32.xlu0 %v632_v20, %s3054_s15 }
 0x1dc   :  { %752 = vrot.lane.b32.xlu1 %v632_v20, %s3056_s17  ;;  %748 = vrot.lane.b32.xlu0 %v632_v20, %s3055_s16 }
 0x216   :  { %v639_v21 = vpop.permute.xlu1 %638  ;;  %v635_v22 = vpop.permute.xlu0 %634 }
 0x217   :  { %v637_v32 = vadd.f32 %v635_v22, %v619_v3 }
 0x219   :  { %v641_v35 = vadd.f32 %v639_v21, %v637_v32 }
 0x21a   :  { %v643_v23 = vpop.permute.xlu1 %642  ;;  %v697_v24 = vpop.permute.xlu0 %696 }
 0x21b   :  { %v645_v38 = vadd.f32 %v643_v23, %v641_v35  ;;  %v699_v39 = vadd.f32 %v697_v24, %v632_v20 }
 0x21e   :  { %v647_v25 = vpop.permute.xlu1 %646  ;;  %v701_v6 = vpop.permute.xlu0 %700 }
 0x21f   :  { %v649_v40 = vadd.f32 %v647_v25, %v645_v38  ;;  %v703_v43 = vadd.f32 %v701_v6, %v699_v39  ;;  %v944_v38 = vld [vmem:[#allocation2 + $0x28] sm:$0x11]  ;;  %v3057_v39 = vmov 0  }
 0x220   :  { %949 = vst.msk [vmem:[#allocation2 + $0x8] sm:$0xf] %vm3715_vm12, %v3057_v39  ;;  %953 = vst.msk [vmem:[#allocation2 + $0x20] sm:$0xf] %vm3715_vm12, %v3057_v39 }
 0x221   :  { %957 = vst.msk [vmem:[#allocation2 + $0xc] sm:$0xf] %vm3713_vm13, %v3057_v39  ;;  %961 = vst.msk [vmem:[#allocation2 + $0x24] sm:$0xf] %vm3713_vm13, %v3057_v39 }
 0x222   :  { %v651_v26 = vpop.permute.xlu1 %650  ;;  %v705_v27 = vpop.permute.xlu0 %704 }
 0x223   :  { %v653_v44 = vadd.f32 %v651_v26, %v649_v40  ;;  %v707_v45 = vadd.f32 %v705_v27, %v703_v43  ;;  %v609_v26 = vld [vmem:[%s3704_s3] sm:$0x1] }
 0x226   :  { %v655_v28 = vpop.permute.xlu1 %654  ;;  %v709_v29 = vpop.permute.xlu0 %708 }
 0x227   :  { %v657_v46 = vadd.f32 %v655_v28, %v653_v44  ;;  %v711_v49 = vadd.f32 %v709_v29, %v707_v45  ;;  %v610_v29 = vld [vmem:[%s3704_s3 + $0x1] sm:$0x1] }
 0x22a   :  { %v659_v30 = vpop.permute.xlu1 %658  ;;  %v713_v31 = vpop.permute.xlu0 %712 }
 0x22b   :  { %v661_v50 = vadd.f32 %v659_v30, %v657_v46  ;;  %v715_v52 = vadd.f32 %v713_v31, %v711_v49 }
 0x22e   :  { %v663_v33 = vpop.permute.xlu1 %662  ;;  %v717_v34 = vpop.permute.xlu0 %716 }
 0x22f   :  { %v665_v53 = vadd.f32 %v663_v33, %v661_v50  ;;  %v719_v56 = vadd.f32 %v717_v34, %v715_v52  ;;  %v930_v33 = vld [vmem:[#allocation2] sm:$0x11] }
 0x230   :  { %v931_v35 = vsel %vm3710_vm11, 0, %v930_v33  ;;  %vm3353_vm11 = vmand %vm3712_vm15, %vm936_vm9  ;;  %vm3716_vm9 = vcmask 195584   ;;  %vm3721_vm15 = vcmask 654336  }
 0x231   :  { %932 = vst [vmem:[#allocation2] sm:$0x11] %v931_v35 }
 0x232   :  { %v667_v36 = vpop.permute.xlu1 %666  ;;  %v721_v37 = vpop.permute.xlu0 %720  ;;  %948 = vst.msk [vmem:[#allocation2] sm:$0xf] %vm3715_vm12, %v3057_v39  ;;  %vm3719_vm12 = vcmask 850944  }
 0x233   :  { %v669_v57 = vadd.f32 %v667_v36, %v665_v53  ;;  %v723_v59 = vadd.f32 %v721_v37, %v719_v56  ;;  %v941_v37 = vld [vmem:[#allocation2 + $0x10] sm:$0x11]  ;;  %956 = vst.msk [vmem:[#allocation2 + $0x4] sm:$0xf] %vm3713_vm13, %v3057_v39  ;;  %vm3718_vm13 = vcmask 719872  }
 0x234   :  { %v942_v40 = vsel %vm940_vm0, 0, %v941_v37 }
 0x235   :  { %943 = vst [vmem:[#allocation2 + $0x10] sm:$0x11] %v942_v40 }
 0x236   :  { %v671_v41 = vpop.permute.xlu1 %670  ;;  %v725_v42 = vpop.permute.xlu0 %724  ;;  %951 = vst.msk [vmem:[#allocation2 + $0x10] sm:$0x1] %vm950_vm7, %v3057_v39 }
 0x237   :  { %v673_v61 = vadd.f32 %v671_v41, %v669_v57  ;;  %v727_v0 = vadd.f32 %v725_v42, %v723_v59  ;;  %v945_v41 = vsel %vm940_vm0, 0, %v944_v38  ;;  %959 = vst.msk [vmem:[#allocation2 + $0x14] sm:$0x1] %vm958_vm4, %v3057_v39  ;;  %vm823_vm0 = vcmask 457728  }
 0x238   :  { %946 = vst [vmem:[#allocation2 + $0x28] sm:$0x11] %v945_v41 }
 0x239   :  { %954 = vst.msk [vmem:[#allocation2 + $0x28] sm:$0x1] %vm950_vm7, %v3057_v39  ;;  %vm813_vm7 = vcmask 130048  }
 0x23a   :  { %v675_v47 = vpop.permute.xlu1 %674  ;;  %v729_v48 = vpop.permute.xlu0 %728  ;;  %962 = vst.msk [vmem:[#allocation2 + $0x2c] sm:$0x1] %vm958_vm4, %v3057_v39  ;;  %vm3714_vm4 = vcmask 64512  }
 0x23b   :  { %v677_v2 = vadd.f32 %v675_v47, %v673_v61  ;;  %v731_v4 = vadd.f32 %v729_v48, %v727_v0 }
 0x23e   :  { %v679_v54 = vpop.permute.xlu1 %678  ;;  %v733_v55 = vpop.permute.xlu0 %732 }
 0x23f   :  { %v681_v5 = vadd.f32 %v679_v54, %v677_v2  ;;  %v735_v9 = vadd.f32 %v733_v55, %v731_v4 }
 0x241   :  { %v1064_v43 = vld [vmem:[#allocation2 + $0x28] sm:$0x11] }
 0x242   :  { %v683_v62 = vpop.permute.xlu1 %682  ;;  %v737_v63 = vpop.permute.xlu0 %736 }
 0x243   :  { %v685_v10 = vadd.f32 %v683_v62, %v681_v5  ;;  %v739_v11 = vadd.f32 %v737_v63, %v735_v9 }
 0x246   :  { %v687_v7 = vpop.permute.xlu1 %686  ;;  %v741_v8 = vpop.permute.xlu0 %740 }
 0x247   :  { %v689_v12 = vadd.f32 %v687_v7, %v685_v10  ;;  %v743_v15 = vadd.f32 %v741_v8, %v739_v11 }
 0x24a   :  { %v691_v13 = vpop.permute.xlu1 %690  ;;  %v745_v14 = vpop.permute.xlu0 %744 }
 0x24b   :  { %v693_v16 = vadd.f32 %v691_v13, %v689_v12  ;;  %v747_v17 = vadd.f32 %v745_v14, %v743_v15  ;;  %v901_v12 = vlaneseq }
 0x24d   :  { %v694_v3 = vmul.f32 0.001953125, %v693_v16 }
 0x24e   :  { %v749_v18 = vpop.permute.xlu0 %748  ;;  %v753_v20 = vpop.permute.xlu1 %752 }
 0x24f   :  { %v751_v19 = vadd.f32 %v749_v18, %v747_v17  ;;  %v757_v22 = vmul.f32 %v694_v3, %v694_v3 }
 0x251   :  { %v755_v21 = vadd.f32 %v753_v20, %v751_v19 }
 0x253   :  { %v756_v23 = vmul.f32 0.001953125, %v755_v21  ;;  %v902_v21 = vshrl.u32 %v901_v12, 7 }
 0x255   :  { %v758_v24 = vsub.f32 %v756_v23, %v757_v22 }
 0x257   :  { %v759_v25 = vmax.f32 %v758_v24, 0.0 }
 0x259   :  { %v760_v6 = vadd.f32 1e-05, %v759_v25 }
 0x25b   :  { %2961 = vrsqrt.f32 %v760_v6 }
 0x265   :  { %v2962_v27 = vpop.eup %2961 }
 0x266   :  { %v3242_v28 = vmul.f32 %v2962_v27, %v609_v26 }
 0x268   :  { %769 = vrot.lane.b32.xlu1 %v3242_v28, %s3055_s16  ;;  %766 = vrot.lane.b32.xlu0 %v3242_v28, %s3056_s17  ;;  %v763_v30 = vmul.f32 %v3242_v28, %v694_v3 }
 0x26a   :  { %v3252_v31 = vsub.f32 %v610_v29, %v763_v30 }
 0x26c   :  { %772 = vrot.lane.b32.xlu0 %v3242_v28, %s3054_s15  ;;  %841 = vrot.lane.b32.xlu1 %v3252_v31, %s3056_s17 }
 0x270   :  { %775 = vrot.lane.b32.xlu0 %v3242_v28, %s3053_s14  ;;  %844 = vrot.lane.b32.xlu1 %v3252_v31, %s3055_s16 }
 0x274   :  { %778 = vrot.lane.b32.xlu0 %v3242_v28, %s3052_s13  ;;  %847 = vrot.lane.b32.xlu1 %v3252_v31, %s3054_s15 }
 0x278   :  { %781 = vrot.lane.b32.xlu0 %v3242_v28, %s3051_s1  ;;  %850 = vrot.lane.b32.xlu1 %v3252_v31, %s3053_s14 }
 0x27c   :  { %784 = vrot.lane.b32.xlu0 %v3242_v28, %s3044_s6  ;;  %853 = vrot.lane.b32.xlu1 %v3252_v31, %s3052_s13 }
 0x280   :  { %787 = vrot.lane.b32.xlu0 %v3242_v28, %s3038_s25  ;;  %856 = vrot.lane.b32.xlu1 %v3252_v31, %s3051_s1 }
 0x284   :  { %790 = vrot.lane.b32.xlu0 %v3242_v28, %s3050_s12  ;;  %859 = vrot.lane.b32.xlu1 %v3252_v31, %s3044_s6 }
 0x288   :  { %793 = vrot.lane.b32.xlu0 %v3242_v28, %s3049_s11  ;;  %862 = vrot.lane.b32.xlu1 %v3252_v31, %s3038_s25 }
 0x28c   :  { %796 = vrot.lane.b32.xlu0 %v3242_v28, %s3048_s10  ;;  %865 = vrot.lane.b32.xlu1 %v3252_v31, %s3050_s12 }
 0x290   :  { %799 = vrot.lane.b32.xlu0 %v3242_v28, %s3047_s9  ;;  %868 = vrot.lane.b32.xlu1 %v3252_v31, %s3049_s11 }
 0x294   :  { %802 = vrot.lane.b32.xlu0 %v3242_v28, %s3046_s8  ;;  %871 = vrot.lane.b32.xlu1 %v3252_v31, %s3048_s10 }
 0x298   :  { %805 = vrot.lane.b32.xlu0 %v3242_v28, %s3045_s7  ;;  %874 = vrot.lane.b32.xlu1 %v3252_v31, %s3047_s9 }
 0x29c   :  { %808 = vrot.lane.b32.xlu0 %v3242_v28, %s3042_s27  ;;  %877 = vrot.lane.b32.xlu1 %v3252_v31, %s3046_s8 }
 0x2a0   :  { %880 = vrot.lane.b32.xlu0 %v3252_v31, %s3045_s7  ;;  %883 = vrot.lane.b32.xlu1 %v3252_v31, %s3042_s27 }
 0x2da   :  { %v770_v44 = vpop.permute.xlu1 %769  ;;  %v767_v45 = vpop.permute.xlu0 %766 }
 0x2db   :  { %v812_v5 = vsel %vm3714_vm4, %v3242_v28, %v767_v45 }
 0x2dc   :  { %v814_v7 = vsel %vm813_vm7, %v812_v5, %v770_v44 }
 0x2de   :  { %v773_v46 = vpop.permute.xlu0 %772  ;;  %v842_v47 = vpop.permute.xlu1 %841 }
 0x2df   :  { %v816_v10 = vsel %vm3716_vm9, %v814_v7, %v773_v46  ;;  %v886_v14 = vsel %vm3714_vm4, %v3252_v31, %v842_v47  ;;  %vm3720_vm4 = vcmask 785408   ;;  %v3392_v31 = vsub.s32 0, %v902_v21 }
 0x2e2   :  { %v776_v48 = vpop.permute.xlu0 %775  ;;  %v845_v49 = vpop.permute.xlu1 %844 }
 0x2e3   :  { %v818_v11 = vsel %vm3717_vm10, %v816_v10, %v776_v48  ;;  %v887_v18 = vsel %vm813_vm7, %v886_v14, %v845_v49 }
 0x2e6   :  { %v779_v50 = vpop.permute.xlu0 %778  ;;  %v848_v52 = vpop.permute.xlu1 %847 }
 0x2e7   :  { %v820_v13 = vsel %vm819_vm14, %v818_v11, %v779_v50  ;;  %v888_v19 = vsel %vm3716_vm9, %v887_v18, %v848_v52  ;;  %vm836_vm9 = vcmask 916480  }
 0x2ea   :  { %v782_v53 = vpop.permute.xlu0 %781  ;;  %v851_v54 = vpop.permute.xlu1 %850 }
 0x2eb   :  { %v822_v15 = vsel %vm821_vm3, %v820_v13, %v782_v53  ;;  %v889_v22 = vsel %vm3717_vm10, %v888_v19, %v851_v54  ;;  %vm838_vm10 = vcmask 982016   ;;  %v933_v53 = vld [vmem:[#allocation2 + $0x18] sm:$0x11] }
 0x2ee   :  { %v785_v55 = vpop.permute.xlu0 %784  ;;  %v854_v56 = vpop.permute.xlu1 %853 }
 0x2ef   :  { %v824_v3 = vsel %vm823_vm0, %v822_v15, %v785_v55  ;;  %v890_v24 = vsel %vm819_vm14, %v889_v22, %v854_v56 }
 0x2f2   :  { %v788_v57 = vpop.permute.xlu0 %787  ;;  %v857_v59 = vpop.permute.xlu1 %856 }
 0x2f3   :  { %v825_v20 = vsel %vm3723_vm2, %v824_v3, %v788_v57  ;;  %v891_v27 = vsel %vm821_vm3, %v890_v24, %v857_v59 }
 0x2f6   :  { %v791_v61 = vpop.permute.xlu0 %790  ;;  %v860_v62 = vpop.permute.xlu1 %859 }
 0x2f7   :  { %v827_v23 = vsel %vm3722_vm1, %v825_v20, %v791_v61  ;;  %v892_v29 = vsel %vm823_vm0, %v891_v27, %v860_v62  ;;  %v2885_v27 = vld [vmem:[#allocation6 + $0x40] sm:$0xff]  }
 0x2f8   :  { %2656 = vmatprep.subr.bf16.mxu1 %v2885_v27 }
 0x2fa   :  { %v794_v63 = vpop.permute.xlu0 %793  ;;  %v863_v0 = vpop.permute.xlu1 %862 }
 0x2fb   :  { %v829_v25 = vsel %vm3721_vm15, %v827_v23, %v794_v63  ;;  %v893_v33 = vsel %vm3723_vm2, %v892_v29, %v863_v0  ;;  %v2887_v29 = vld [vmem:[#allocation6 + $0x48] sm:$0xff]  }
 0x2fe   :  { %v797_v2 = vpop.permute.xlu0 %796  ;;  %v866_v4 = vpop.permute.xlu1 %865 }
 0x2ff   :  { %v831_v28 = vsel %vm3718_vm13, %v829_v25, %v797_v2  ;;  %v894_v36 = vsel %vm3722_vm1, %v893_v33, %v866_v4  ;;  %v2891_v33 = vld [vmem:[#allocation6 + $0x80] sm:$0xff]   ;;  %vm3743_vm1 = vmor %vm3359_vm6, %vm3353_vm11 }
 0x302   :  { %v800_v8 = vpop.permute.xlu0 %799  ;;  %v869_v9 = vpop.permute.xlu1 %868 }
 0x303   :  { %v833_v30 = vsel %vm3720_vm4, %v831_v28, %v800_v8  ;;  %v895_v41 = vsel %vm3721_vm15, %v894_v36, %v869_v9  ;;  %v2886_v28 = vld [vmem:[#allocation6] sm:$0xff]   ;;  %v2888_v36 = vld [vmem:[#allocation6 + $0x8] sm:$0xff]   ;;  %vm1054_vm15 = vcmask 61444  }
 0x304   :  { %2657 = vmatpush3.bf16.msra.mxu1 %v2886_v28 }
 0x305   :  { %2658 = vmatprep.subr.bf16.mxu1 %v2887_v29 }
 0x306   :  { %v803_v16 = vpop.permute.xlu0 %802  ;;  %v872_v17 = vpop.permute.xlu1 %871 }
 0x307   :  { %v835_v35 = vsel %vm3719_vm12, %v833_v30, %v803_v16  ;;  %v896_v45 = vsel %vm3718_vm13, %v895_v41, %v872_v17  ;;  %vm3734_vm13 = vmor %vm3317_vm8, %vm3311_vm5  ;;  %vm973_vm5 = vsmask.f32 4368  ;;  %vm3737_vm8 = vsmask.f32 256  ;;  %v2889_v30 = vld [vmem:[#allocation6 + $0xc0] sm:$0xff]   ;;  %v2892_v41 = vld [vmem:[#allocation6 + $0x10] sm:$0xff]  }
 0x308   :  { %v934_v56 = vsel %vm3734_vm13, 0, %v933_v53  ;;  %2684 = vmatprep.subr.bf16.mxu0 %v2889_v30  ;;  %2659 = vmatpush3.bf16.msra.mxu1 %v2888_v36  ;;  %v2902_v53 = vld [vmem:[#allocation6 + $0x68] sm:$0xff]   ;;  %vm3738_vm13 = vcmask 1043520  }
 0x309   :  { %935 = vst [vmem:[#allocation2 + $0x18] sm:$0x11] %v934_v56  ;;  %2685 = vmatpush3.bf16.msra.mxu0 %v2891_v33  ;;  %v2904_v56 = vld [vmem:[#allocation6 + $0x28] sm:$0xff]  }
 0x30a   :  { %v806_v6 = vpop.permute.xlu0 %805  ;;  %v875_v26 = vpop.permute.xlu1 %874 }
 0x30b   :  { %v837_v37 = vsel %vm836_vm9, %v835_v35, %v806_v6  ;;  %v897_v47 = vsel %vm3720_vm4, %v896_v45, %v875_v26  ;;  %vm3736_vm4 = vcmask 126016   ;;  %v2893_v35 = vld [vmem:[#allocation6 + $0xc8] sm:$0xff]   ;;  %v2899_v45 = vld [vmem:[#allocation6 + $0x90] sm:$0xff]  }
 0x30c   :  { %960 = vst.msk [vmem:[#allocation2 + $0x1c] sm:$0xf] %vm3736_vm4, %v3057_v39  ;;  %2686 = vmatprep.subr.bf16.mxu0 %v2893_v35  ;;  %vm3739_vm4 = vcmask 64516  }
 0x30e   :  { %v809_v38 = vpop.permute.xlu0 %808  ;;  %v878_v40 = vpop.permute.xlu1 %877 }
 0x30f   :  { %v839_v44 = vsel %vm838_vm10, %v837_v37, %v809_v38  ;;  %v898_v48 = vsel %vm3719_vm12, %v897_v47, %v878_v40  ;;  %vm3735_vm12 = vcmask 60416   ;;  %v2890_v37 = vld [vmem:[#allocation6 + $0x50] sm:$0xff]   ;;  %v2895_v38 = vld [vmem:[#allocation6 + $0x88] sm:$0xff]   ;;  %v2896_v47 = vld [vmem:[#allocation6 + $0x18] sm:$0xff]  }
 0x310   :  { %v904_v46 = vrot.slane %v839_v44, %v3392_v31  ;;  %952 = vst.msk [vmem:[#allocation2 + $0x18] sm:$0xf] %vm3735_vm12, %v3057_v39  ;;  %vm974_vm12 = vmor %vm3737_vm8, %vm973_vm5  ;;  %v2897_v40 = vld [vmem:[#allocation6 + $0xd0] sm:$0xff]   ;;  %2660 = vmatprep.subr.bf16.mxu1 %v2890_v37  ;;  %v2894_v44 = vld [vmem:[#allocation6 + $0x58] sm:$0xff]   ;;  %2687 = vmatpush3.bf16.msra.mxu0 %v2895_v38  ;;  %vm1052_vm8 = vcmask 1040448  }
 0x311   :  { %2688 = vmatprep.subr.bf16.mxu0 %v2897_v40  ;;  %2661 = vmatpush3.bf16.msra.mxu1 %v2892_v41  ;;  %vm3429_vm5 = vmor %vm3739_vm4, %vm3738_vm13  ;;  %vm3745_vm13 = vsmask.f32 256 }
 0x312   :  { %v881_v49 = vpop.permute.xlu0 %880  ;;  %v884_v50 = vpop.permute.xlu1 %883  ;;  %v905_v54 = vmul.f32 %v904_v46, %v3189_v51  ;;  %v906_v57 = vmul.f32 %v904_v46, %v3191_v58  ;;  %v907_v59 = vmul.f32 %v904_v46, %v3195_v60  ;;  %v908_v61 = vmul.f32 %v904_v46, %v3203_v1  ;;  %v2901_v46 = vld [vmem:[#allocation6 + $0xd8] sm:$0xff]   ;;  %2662 = vmatprep.subr.bf16.mxu1 %v2894_v44  ;;  %vm3443_vm4 = vmand %vm1052_vm8, %vm3745_vm13 }
 0x313   :  { %v899_v52 = vsel %vm836_vm9, %v898_v48, %v881_v49  ;;  %v2898_v48 = vld [vmem:[#allocation6 + $0x60] sm:$0xff]   ;;  %v2903_v49 = vld [vmem:[#allocation6 + $0x98] sm:$0xff]   ;;  %vm3751_vm8 = vmor %vm3359_vm6, %vm3353_vm11 }
 0x314   :  { %v900_v55 = vsel %vm838_vm10, %v899_v52, %v884_v50  ;;  %2689 = vmatpush3.bf16.msra.mxu0 %v2899_v45  ;;  %v2905_v50 = vld [vmem:[#allocation6 + $0xe0] sm:$0xff]  }
 0x315   :  { %v912_v62 = vrot.slane %v900_v55, %v3392_v31  ;;  %2690 = vmatprep.subr.bf16.mxu0 %v2901_v46  ;;  %2663 = vmatpush3.bf16.msra.mxu1 %v2896_v47  ;;  %v2900_v52 = vld [vmem:[#allocation6 + $0x20] sm:$0xff]   ;;  %v2909_v55 = vld [vmem:[#allocation6 + $0xe8] sm:$0xff]  }
 0x316   :  { %2664 = vmatprep.subr.bf16.mxu1 %v2898_v48 }
 0x317   :  { %v914_v51 = vadd.f32 %v912_v62, %v906_v57  ;;  %v916_v34 = vadd.f32 %v912_v62, %v908_v61  ;;  %v913_v32 = vadd.f32 %v912_v62, %v905_v54  ;;  %v915_v63 = vadd.f32 %v912_v62, %v907_v59  ;;  %v2907_v54 = vld [vmem:[#allocation6 + $0xa0] sm:$0xff]   ;;  %v2906_v57 = vld [vmem:[#allocation6 + $0x70] sm:$0xff]   ;;  %v2911_v59 = vld [vmem:[#allocation6 + $0xa8] sm:$0xff]  }
 0x318   :  { %2691 = vmatpush3.bf16.msra.mxu0 %v2903_v49  ;;  %v2908_v61 = vld [vmem:[#allocation6 + $0x30] sm:$0xff]   ;;  %v2910_v62 = vld [vmem:[#allocation6 + $0x78] sm:$0xff]  }
 0x319   :  { %v917_v0 = vmax.f32 %v913_v32, 0.0  ;;  %v918_v2 = vmax.f32 %v914_v51, 0.0  ;;  %v919_v58 = vmax.f32 %v915_v63, 0.0  ;;  %v920_v4 = vmax.f32 %v916_v34, 0.0  ;;  %2692 = vmatprep.subr.bf16.mxu0 %v2905_v50  ;;  %2665 = vmatpush3.bf16.msra.mxu1 %v2900_v52  ;;  %v2912_v51 = vld [vmem:[#allocation6 + $0x38] sm:$0xff]   ;;  %v1045_v32 = vld [vmem:[#allocation2] sm:$0xff] }
 0x31a   :  { %2666 = vmatprep.subr.bf16.mxu1 %v2902_v53 }
 0x31b   :  { %v2590_v60 = vpack.c.bf16 %v917_v0, %v917_v0  ;;  %v2591_v5 = vpack.c.bf16 %v918_v2, %v918_v2  ;;  %v2592_v1 = vpack.c.bf16 %v919_v58, %v919_v58  ;;  %v2593_v7 = vpack.c.bf16 %v920_v4, %v920_v4  ;;  %v2913_v2 = vld [vmem:[#allocation6 + $0xf0] sm:$0xff]  }
 0x31c   :  { %2693 = vmatpush3.bf16.msra.mxu0 %v2907_v54 }
 0x31d   :  { %v976_v8 = vshrl.u32 %v2590_v60, 16  ;;  %v984_v9 = vshrl.u32 %v2591_v5, 16  ;;  %v993_v10 = vshrl.u32 %v2592_v1, 16  ;;  %v1001_v11 = vshrl.u32 %v2593_v7, 16  ;;  %2694 = vmatprep.subr.bf16.mxu0 %v2909_v55  ;;  %2667 = vmatpush3.bf16.msra.mxu1 %v2904_v56 }
 0x31e   :  { %v979_v13 = vshll.u32 %v2590_v60, 16  ;;  %v987_v14 = vshll.u32 %v2591_v5, 16  ;;  %v1004_v19 = vshll.u32 %v2593_v7, 16  ;;  %v996_v21 = vshll.u32 %v2592_v1, 16  ;;  %2668 = vmatprep.subr.bf16.mxu1 %v2906_v57  ;;  %v2914_v5 = vld [vmem:[#allocation6 + $0xb0] sm:$0xff]   ;;  %v2915_v1 = vld [vmem:[#allocation6 + $0x140] sm:$0xff]  }
 0x31f   :  { %v978_v12 = vrot.slane %v976_v8, 7  ;;  %v986_v39 = vrot.slane %v984_v9, 7  ;;  %v995_v15 = vrot.slane %v993_v10, 7  ;;  %v1003_v16 = vrot.slane %v1001_v11, 7  ;;  %v1060_v10 = vld [vmem:[#allocation2 + $0x18] sm:$0xff] }
 0x320   :  { %2695 = vmatpush3.bf16.msra.mxu0 %v2911_v59 }
 0x321   :  { %v981_v17 = vor.u32 %v979_v13, %v978_v12  ;;  %v982_v18 = vrot.slane %v978_v12, 4  ;;  %v989_v3 = vor.u32 %v987_v14, %v986_v39  ;;  %v999_v22 = vrot.slane %v995_v15, 4  ;;  %2669 = vmatpush3.bf16.msra.mxu1 %v2908_v61  ;;  %2696 = vmatprep.subr.bf16.mxu0 %v2913_v2 }
 0x322   :  { %v1006_v23 = vor.u32 %v1004_v19, %v1003_v16  ;;  %v998_v24 = vor.u32 %v996_v21, %v995_v15  ;;  %v991_v6 = vrot.slane %v986_v39, 4  ;;  %v1008_v26 = vrot.slane %v1003_v16, 4  ;;  %2670 = vmatprep.subr.bf16.mxu1 %v2910_v62  ;;  %v2917_v39 = vld [vmem:[#allocation6 + $0xf8] sm:$0xff]  }
 0x323   :  { %1009 = vrot.lane.b32.xlu0 %v981_v17, %s3056_s17  ;;  %v990_v20 = vsel %vm974_vm12, %v982_v18, %v989_v3  ;;  %v2918_v17 = vld [vmem:[#allocation6 + $0xb8] sm:$0xff]  }
 0x324   :  { %1011 = vrot.lane.b32.xlu1 %v990_v20, %s3056_s17  ;;  %v1007_v25 = vsel %vm974_vm12, %v999_v22, %v1006_v23  ;;  %vm3742_vm12 = vcmask 64512   ;;  %2697 = vmatpush3.bf16.msra.mxu0 %v2914_v5  ;;  %v1057_v20 = vld [vmem:[#allocation2 + $0x10] sm:$0x11] }
 0x325   :  { %2671 = vmatpush3.bf16.msra.mxu1 %v2912_v51  ;;  %vm3744_vm2 = vmmov %vm3742_vm12  ;;  %2698 = vmatprep.subr.bf16.mxu0 %v2917_v39  ;;  %v2921_v23 = vld [vmem:[#allocation6 + $0x1c0] sm:$0xff]  }
 0x326   :  { %2712 = vmatprep.subr.bf16.mxu1 %v2915_v1  ;;  %vm3752_vm13 = vmmov %vm3742_vm12 }
 0x327   :  { %1015 = vrot.lane.b32.xlu0 %v998_v24, %s3056_s17  ;;  %vm3753_vm11 = vmmov %vm3742_vm12 }
 0x328   :  { %1017 = vrot.lane.b32.xlu1 %v1007_v25, %s3056_s17  ;;  %2699 = vmatpush3.bf16.msra.mxu0 %v2918_v17  ;;  %vm3754_vm6 = vmmov %vm3753_vm11 }
 0x329   :  { %2740 = vmatprep.subr.bf16.mxu0 %v2921_v23 }
 0x32b   :  { %1013 = vrot.lane.b32.xlu0 %v991_v6, %s3056_s17 }
 0x32c   :  { %1019 = vrot.lane.b32.xlu1 %v1008_v26, %s3056_s17 }
 0x395   :  { %v1010_v34 = vpop.permute.xlu0 %1009 }
 0x396   :  { %v1021_v63 = vrot.slane %v1010_v34, 4  ;;  %v1012_v0 = vpop.permute.xlu1 %1011 }
 0x397   :  { %v1022_v4 = vrot.slane %v1012_v0, 4 }
 0x398   :  { %v1028_v60 = vsel %vm3742_vm12, %v1021_v63, %v1010_v34 }
 0x399   :  { %v1046_v7 = vsel %vm3743_vm1, %v1028_v60, %v1045_v32  ;;  %v1029_v8 = vsel %vm3744_vm2, %v1022_v4, %v1012_v0  ;;  %v1016_v9 = vpop.permute.xlu0 %1015  ;;  %vm3748_vm1 = vsmask.f32 4352 }
 0x39a   :  { %1047 = vst [vmem:[#allocation2] sm:$0xff] %v1046_v7  ;;  %1051 = vst.msk [vmem:[#allocation2 + $0x8] sm:$0xff] %vm3429_vm5, %v1029_v8  ;;  %v1024_v11 = vrot.slane %v1016_v9, 4  ;;  %v1018_v12 = vpop.permute.xlu1 %1017 }
 0x39b   :  { %v1025_v14 = vrot.slane %v1018_v12, 4  ;;  %vm3449_vm2 = vmand %vm1054_vm15, %vm3748_vm1 }
 0x39c   :  { %v1031_v16 = vsel %vm3742_vm12, %v1024_v11, %v1016_v9  ;;  %vm1056_vm15 = vmor %vm3449_vm2, %vm3443_vm4  ;;  %vm3758_vm2 = vcmask 1046528  }
 0x39d   :  { %v1061_v18 = vsel %vm3751_vm8, %v1031_v16, %v1060_v10  ;;  %v1032_v3 = vsel %vm3752_vm13, %v1025_v14, %v1018_v12  ;;  %v1014_v19 = vpop.permute.xlu0 %1013  ;;  %vm3759_vm12 = vmmov %vm3758_vm2 }
 0x39e   :  { %1062 = vst [vmem:[#allocation2 + $0x18] sm:$0xff] %v1061_v18  ;;  %1063 = vst.msk [vmem:[#allocation2 + $0x20] sm:$0xff] %vm3429_vm5, %v1032_v3  ;;  %v1023_v21 = vrot.slane %v1014_v19, 4  ;;  %v1020_v22 = vpop.permute.xlu1 %1019  ;;  %vm3755_vm5 = vsmask.f32 7424 }
 0x39f   :  { %v1026_v42 = vrot.slane %v1020_v22, 4  ;;  %vm3756_vm4 = vmmov %vm3755_vm5 }
 0x3a0   :  { %v1030_v24 = vsel %vm3753_vm11, %v1023_v21, %v1014_v19  ;;  %vm3757_vm1 = vmmov %vm3756_vm4 }
 0x3a1   :  { %v1058_v25 = vsel %vm1056_vm15, %v1030_v24, %v1057_v20  ;;  %v1033_v6 = vsel %vm3754_vm6, %v1026_v42, %v1020_v22  ;;  %v3473_v26 = vld [vmem:[#allocation2 + $0x8] sm:$0xff]  ;;  %v1067_v27 = vld [vmem:[#allocation2] sm:$0xf]  ;;  %vm3760_vm8 = vmmov %vm3758_vm2 }
 0x3a2   :  { %v1068_v28 = vld [vmem:[#allocation2 + $0x8] sm:$0xf]  ;;  %1059 = vst [vmem:[#allocation2 + $0x10] sm:$0x11] %v1058_v25  ;;  %v1065_v29 = vsel %vm1056_vm15, %v1033_v6, %v1064_v43  ;;  %v2503_v30 = vcombine.high %v1046_v7, %v3473_v26  ;;  %v2502_v33 = vcombine.low %v1046_v7, %v3473_v26  ;;  %v1079_v53 = vld [vmem:[#allocation2] sm:$0xe]  ;;  %vm3761_vm13 = vmmov %vm3758_vm2 }
 0x3a3   :  { %v3482_v35 = vcombine.low %v1067_v27, %v1068_v28  ;;  %1066 = vst [vmem:[#allocation2 + $0x28] sm:$0x11] %v1065_v29  ;;  %v2512_v34 = vcombine.low %v1079_v53, %v1068_v28  ;;  %v1081_v5 = vld [vmem:[#allocation2] sm:$0xee]  ;;  %vm3762_vm15 = vmmov %vm3758_vm2 }
 0x3a4   :  { %1113 = vrot.lane.b32.xlu1 %v2503_v30, %s3042_s27  ;;  %1111 = vrot.lane.b32.xlu0 %v2502_v33, %s3042_s27  ;;  %v1194_v37 = vshll.u32 %v2503_v30, 16  ;;  %v1182_v38 = vshll.u32 %v2502_v33, 16  ;;  %v1192_v54 = vshrl.u32 %v2503_v30, 16  ;;  %v1180_v55 = vshrl.u32 %v2502_v33, 16  ;;  %vm3763_vm11 = vmmov %vm3757_vm1 }
 0x3a5   :  { %v3486_v36 = vld [vmem:[#allocation2 + $0x20] sm:$0xff]  ;;  %v1146_v44 = vshll.u32 %v3482_v35, 16  ;;  %v1144_v59 = vshrl.u32 %v3482_v35, 16  ;;  %v1257_v1 = vrot.slane %v2512_v34, 1  ;;  %v2515_v10 = vcombine.high %v1081_v5, %v3473_v26  ;;  %v1082_v12 = vld [vmem:[#allocation2 + $0x18] sm:$0xee]  ;;  %vm3764_vm6 = vmmov %vm3757_vm1 }
 0x3a6   :  { %v3489_v40 = vcombine.high %v1061_v18, %v3486_v36  ;;  %v3492_v41 = vcombine.low %v1061_v18, %v3486_v36  ;;  %v1196_v46 = vrot.slane %v1194_v37, 1  ;;  %v1184_v47 = vrot.slane %v1182_v38, 1 }
 0x3a7   :  { %v1148_v52 = vrot.slane %v1146_v44, 1  ;;  %v2514_v11 = vcombine.low %v1081_v5, %v3473_v26  ;;  %v1278_v16 = vrot.slane %v2515_v10, 1  ;;  %v2517_v18 = vcombine.high %v1082_v12, %v3486_v36  ;;  %v2928_v5 = vld [vmem:[#allocation6 + $0x1c8] sm:$0xff]   ;;  %v2931_v10 = vld [vmem:[#allocation6 + $0x118] sm:$0xff]  }
 0x3a8   :  { %1117 = vrot.lane.b32.xlu1 %v3489_v40, %s3042_s27  ;;  %1115 = vrot.lane.b32.xlu0 %v3492_v41, %s3042_s27  ;;  %v1197_v62 = vor.u32 %v1196_v46, %v1192_v54  ;;  %v1185_v51 = vor.u32 %v1184_v47, %v1180_v55  ;;  %v2516_v3 = vcombine.low %v1082_v12, %v3486_v36  ;;  %v1218_v19 = vshll.u32 %v3489_v40, 16  ;;  %v2919_v54 = vld [vmem:[#allocation6 + $0x148] sm:$0xff]  }
 0x3a9   :  { %v1077_v45 = vld [vmem:[#allocation2 + $0x10] sm:$0x11]  ;;  %v1149_v0 = vor.u32 %v1148_v52, %v1144_v59  ;;  %v1275_v17 = vrot.slane %v2514_v11, 1  ;;  %v1206_v20 = vshll.u32 %v3492_v41, 16  ;;  %v1284_v25 = vrot.slane %v2517_v18, 1  ;;  %v2932_v11 = vld [vmem:[#allocation6 + $0x1d0] sm:$0xff]  }
 0x3aa   :  { %v2509_v48 = vcombine.high %v1077_v45, %v1077_v45  ;;  %v2508_v49 = vcombine.low %v1077_v45, %v1077_v45  ;;  %v2878_v50 = vld [vmem:[#allocation2 + $0x10] ss:$0 sps:$4 sm:$0x11]   ;;  %v1078_v8 = vld [vmem:[#allocation2 + $0x28] sm:$0x11]  ;;  %v1281_v6 = vrot.slane %v2516_v3, 1 }
 0x3ab   :  { %v1151_v61 = vshll.u32 %v2878_v50, 16  ;;  %v1258_v7 = vrot.slane %v2878_v50, 1  ;;  %v2511_v13 = vcombine.high %v1078_v8, %v1078_v8  ;;  %v2510_v39 = vcombine.low %v1078_v8, %v1078_v8  ;;  %v2916_v52 = vld [vmem:[#allocation6 + $0x100] sm:$0xff]   ;;  %v2930_v8 = vld [vmem:[#allocation6 + $0x188] sm:$0xff]  }
 0x3ac   :  { %1126 = vrot.lane.b32.xlu1 %v2503_v30, %s3045_s7  ;;  %1124 = vrot.lane.b32.xlu0 %v2502_v33, %s3045_s7  ;;  %v1199_v56 = vshll.u32 %v2509_v48, 16  ;;  %v1187_v57 = vshll.u32 %v2508_v49, 16  ;;  %v1279_v14 = vrot.slane %v2509_v48, 1  ;;  %v1276_v15 = vrot.slane %v2508_v49, 1 }
 0x3ad   :  { %v1153_v2 = vrot.slane %v1151_v61, 1  ;;  %v3508_v9 = vsel %vm3758_vm2, %v1257_v1, %v1258_v7  ;;  %v1285_v21 = vrot.slane %v2511_v13, 1  ;;  %v1282_v22 = vrot.slane %v2510_v39, 1  ;;  %v3545_v48 = vld [vmem:[#allocation2 + $0x28] ss:$0 sps:$4 sm:$0x11]  }
 0x3ae   :  { %v1201_v32 = vrot.slane %v1199_v56, 1  ;;  %v1189_v63 = vrot.slane %v1187_v57, 1  ;;  %v1280_v43 = vsel %vm3759_vm12, %v1278_v16, %v1279_v14  ;;  %v1277_v42 = vsel %vm3760_vm8, %v1275_v17, %v1276_v15  ;;  %v2920_v61 = vld [vmem:[#allocation6 + $0x108] sm:$0xff]   ;;  %v2929_v1 = vld [vmem:[#allocation6 + $0x158] sm:$0xff]   ;;  %v2934_v15 = vld [vmem:[#allocation6 + $0x190] sm:$0xff]  }
 0x3af   :  { %v1154_v60 = vsel %vm3757_vm1, %v1149_v0, %v1153_v2  ;;  %v1223_v23 = vshll.u32 %v2511_v13, 16  ;;  %v1211_v24 = vshll.u32 %v2510_v39, 16  ;;  %v1220_v26 = vrot.slane %v1218_v19, 1  ;;  %v2933_v39 = vld [vmem:[#allocation6 + $0x160] sm:$0xff]   ;;  %v2936_v17 = vld [vmem:[#allocation6 + $0x1d8] sm:$0xff]   ;;  %v2937_v19 = vld [vmem:[#allocation6 + $0x168] sm:$0xff]  }
 0x3b0   :  { %v1202_v58 = vsel %vm3755_vm5, %v1197_v62, %v1201_v32  ;;  %v1190_v4 = vsel %vm3756_vm4, %v1185_v51, %v1189_v63  ;;  %1968 = vmatprep.mubr.bf16.mxu0 %v1154_v60  ;;  %v1208_v27 = vrot.slane %v1206_v20, 1  ;;  %v1216_v28 = vshrl.u32 %v3489_v40, 16  ;;  %v2922_v51 = vld [vmem:[#allocation6 + $0x150] sm:$0xff]   ;;  %v2923_v32 = vld [vmem:[#allocation6 + $0x180] sm:$0xff]   ;;  %vm3765_vm5 = vmmov %vm3757_vm1 }
 0x3b1   :  { %1241 = vrot.lane.b32.xlu1 %v1202_v58, %s3045_s7  ;;  %1239 = vrot.lane.b32.xlu0 %v1190_v4, %s3045_s7  ;;  %v1204_v29 = vshrl.u32 %v3492_v41, 16  ;;  %v1286_v30 = vsel %vm3761_vm13, %v1284_v25, %v1285_v21  ;;  %v1283_v33 = vsel %vm3762_vm15, %v1281_v6, %v1282_v22  ;;  %v1225_v36 = vrot.slane %v1223_v23, 1  ;;  %v2935_v16 = vld [vmem:[#allocation6 + $0x120] sm:$0xff]   ;;  %v2938_v20 = vld [vmem:[#allocation6 + $0x198] sm:$0xff]   ;;  %v2939_v21 = vld [vmem:[#allocation6 + $0x128] sm:$0xff]  }
 0x3b2   :  { %v1213_v37 = vrot.slane %v1211_v24, 1  ;;  %v1221_v38 = vor.u32 %v1220_v26, %v1216_v28  ;;  %v1163_v56 = vshll.u32 %v3545_v48, 16  ;;  %v2941_v23 = vld [vmem:[#allocation6 + $0x170] sm:$0xff]   ;;  %v2942_v25 = vld [vmem:[#allocation6 + $0x1a0] sm:$0xff]   ;;  %v2944_v26 = vld [vmem:[#allocation6 + $0x1e8] sm:$0xff]   ;;  %vm3767_vm1 = vcmask 64512  }
 0x3b3   :  { %v1209_v44 = vor.u32 %v1208_v27, %v1204_v29  ;;  %v2943_v6 = vld [vmem:[#allocation6 + $0x130] sm:$0xff]   ;;  %v2945_v29 = vld [vmem:[#allocation6 + $0x178] sm:$0xff]   ;;  %vm3766_vm4 = vmmov %vm3758_vm2  ;;  %vm3768_vm2 = vcmask 195584   ;;  %vm3769_vm12 = vcmask 261120   ;;  %vm3772_vm15 = vcmask 523264  }
 0x3b4   :  { %v1226_v45 = vsel %vm3763_vm11, %v1221_v38, %v1225_v36  ;;  %v1165_v0 = vrot.slane %v1163_v56, 1  ;;  %v2947_v36 = vld [vmem:[#allocation6 + $0x138] sm:$0xff]   ;;  %vm3770_vm8 = vmmov %vm3767_vm1 }
 0x3b5   :  { %1229 = vrot.lane.b32.xlu1 %v1202_v58, %s3042_s27  ;;  %1227 = vrot.lane.b32.xlu0 %v1190_v4, %s3042_s27  ;;  %v1214_v46 = vsel %vm3764_vm6, %v1209_v44, %v1213_v37  ;;  %v2927_v4 = vld [vmem:[#allocation6 + $0x110] sm:$0xff]   ;;  %vm3771_vm13 = vmmov %vm3768_vm2  ;;  %vm3774_vm6 = vcmask 588800  }
 0x3b6   :  { %v2948_v37 = vld [vmem:[#allocation6 + $0x1f0] sm:$0xff]   ;;  %vm3773_vm11 = vmmov %vm3769_vm12 }
 0x3b9   :  { %1130 = vrot.lane.b32.xlu1 %v3489_v40, %s3045_s7  ;;  %1128 = vrot.lane.b32.xlu0 %v3492_v41, %s3045_s7  ;;  %v1069_v40 = vld [vmem:[#allocation2 + $0x18] sm:$0xf]  ;;  %v3542_v41 = vld [vmem:[#allocation2 + $0x20] sm:$0xf] }
 0x3ba   :  { %v2501_v47 = vcombine.low %v1069_v40, %v3542_v41 }
 0x3bc   :  { %v1158_v55 = vshll.u32 %v2501_v47, 16  ;;  %v1156_v63 = vshrl.u32 %v2501_v47, 16 }
 0x3bd   :  { %1289 = vrot.lane.b32.xlu1 %v1280_v43, %s3042_s27  ;;  %1287 = vrot.lane.b32.xlu0 %v1277_v42, %s3042_s27 }
 0x3be   :  { %v1160_v34 = vrot.slane %v1158_v55, 1 }
 0x3c0   :  { %v1161_v60 = vor.u32 %v1160_v34, %v1156_v63 }
 0x3c1   :  { %1293 = vrot.lane.b32.xlu1 %v1286_v30, %s3042_s27  ;;  %1291 = vrot.lane.b32.xlu0 %v1283_v33, %s3042_s27 }
 0x3c2   :  { %v1166_v7 = vsel %vm3765_vm5, %v1161_v60, %v1165_v0  ;;  %v2959_v60 = vld [vmem:[#allocation6 + $0x230] sm:$0xff]   ;;  %vm3775_vm5 = vcmask 654336  }
 0x3c5   :  { %1245 = vrot.lane.b32.xlu1 %v1226_v45, %s3045_s7  ;;  %1243 = vrot.lane.b32.xlu0 %v1214_v46, %s3045_s7 }
 0x3c9   :  { %1233 = vrot.lane.b32.xlu1 %v1226_v45, %s3042_s27  ;;  %1231 = vrot.lane.b32.xlu0 %v1214_v46, %s3042_s27  ;;  %v2950_v45 = vld [vmem:[#allocation6 + $0x200] sm:$0xff]   ;;  %v2949_v46 = vld [vmem:[#allocation6 + $0x1b0] sm:$0xff]  }
 0x3cd   :  { %1301 = vrot.lane.b32.xlu1 %v1280_v43, %s3045_s7  ;;  %1299 = vrot.lane.b32.xlu0 %v1277_v42, %s3045_s7  ;;  %v2940_v42 = vld [vmem:[#allocation6 + $0x1e0] sm:$0xff]  }
 0x3d1   :  { %1305 = vrot.lane.b32.xlu1 %v1286_v30, %s3045_s7  ;;  %1303 = vrot.lane.b32.xlu0 %v1283_v33, %s3045_s7  ;;  %v2946_v33 = vld [vmem:[#allocation6 + $0x1a8] sm:$0xff]  }
 0x416   :  { %v1114_v49 = vpop.permute.xlu1 %1113  ;;  %v1112_v50 = vpop.permute.xlu0 %1111 }
 0x417   :  { %v1120_v53 = vsel %vm838_vm10, %v1112_v50, %v1114_v49  ;;  %v2951_v49 = vld [vmem:[#allocation6 + $0x1f8] sm:$0xff]   ;;  %v2953_v50 = vld [vmem:[#allocation6 + $0x208] sm:$0xff]  }
 0x418   :  { %1919 = vmatprep.mubr.bf16.mxu1 %v1120_v53 }
 0x419   :  { %1920 = vmatmul.mubr.bf16.vlgmr.msra.gmra.mrb[8].mxu1 %v3482_v35 }
 0x41a   :  { %2713 = vmatpush3.bf16.msra.mxu1 %v2916_v52  ;;  %v1118_v57 = vpop.permute.xlu1 %1117  ;;  %v1116_v59 = vpop.permute.xlu0 %1115 }
 0x41b   :  { %v1121_v62 = vsel %vm838_vm10, %v1116_v59, %v1118_v57  ;;  %2714 = vmatprep.subr.bf16.mxu1 %v2919_v54  ;;  %v2952_v54 = vld [vmem:[#allocation6 + $0x1b8] sm:$0xff]   ;;  %v2955_v57 = vld [vmem:[#allocation6 + $0x210] sm:$0xff]   ;;  %v1080_v59 = vld [vmem:[#allocation2 + $0x18] sm:$0xe] }
 0x41c   :  { %1927 = vmatprep.mubr.bf16.mxu1 %v1121_v62  ;;  %v2513_v0 = vcombine.low %v1080_v59, %v3542_v41  ;;  %v2960_v41 = vld [vmem:[#allocation6 + $0x238] sm:$0xff]  }
 0x41e   :  { %2715 = vmatpush3.bf16.msra.mxu1 %v2920_v61  ;;  %v1127_v2 = vpop.permute.xlu1 %1126  ;;  %v1125_v58 = vpop.permute.xlu0 %1124 }
 0x41f   :  { %v1133_v35 = vsel %vm836_vm9, %v1125_v58, %v1127_v2  ;;  %2716 = vmatprep.subr.bf16.mxu1 %v2922_v51  ;;  %v2956_v51 = vld [vmem:[#allocation6 + $0x218] sm:$0xff]   ;;  %v1261_v2 = vrot.slane %v3545_v48, 1  ;;  %v2957_v58 = vld [vmem:[#allocation6 + $0x220] sm:$0xff]  }
 0x420   :  { %1969 = vmatmul.mubr.bf16.vlgmr.msra.gmra.mrb[12].mxu0 %v1133_v35  ;;  %v2958_v35 = vld [vmem:[#allocation6 + $0x228] sm:$0xff]  }
 0x421   :  { %2741 = vmatpush3.bf16.msra.mxu0 %v2923_v32  ;;  %1928 = vmatmul.mubr.bf16.gmra.mrb[12].mxu1 %v2501_v47 }
 0x422   :  { %1976 = vmatprep.mubr.bf16.mxu0 %v1166_v7  ;;  %2717 = vmatpush3.bf16.msra.mxu1 %v2927_v4  ;;  %v1260_v4 = vrot.slane %v2513_v0, 1 }
 0x423   :  { %v1242_v12 = vpop.permute.xlu1 %1241  ;;  %2742 = vmatprep.subr.bf16.mxu0 %v2928_v5  ;;  %v1240_v13 = vpop.permute.xlu0 %1239  ;;  %2718 = vmatprep.subr.bf16.mxu1 %v2929_v1 }
 0x424   :  { %v1247_v14 = vsel %vm836_vm9, %v1240_v13, %v1242_v12 }
 0x425   :  { %2743 = vmatpush3.bf16.msra.mxu0 %v2930_v8  ;;  %2017 = vmatprep.mubr.bf16.mxu1 %v1247_v14 }
 0x426   :  { %2719 = vmatpush3.bf16.msra.mxu1 %v2931_v10  ;;  %2744 = vmatprep.subr.bf16.mxu0 %v2932_v11 }
 0x427   :  { %v1230_v18 = vpop.permute.xlu1 %1229  ;;  %v1228_v3 = vpop.permute.xlu0 %1227  ;;  %2720 = vmatprep.subr.bf16.mxu1 %v2933_v39 }
 0x428   :  { %v1235_v52 = vsel %vm838_vm10, %v1228_v3, %v1230_v18 }
 0x429   :  { %2745 = vmatpush3.bf16.msra.mxu0 %v2934_v15 }
 0x42a   :  { %2721 = vmatpush3.bf16.msra.mxu1 %v2935_v16  ;;  %2746 = vmatprep.subr.bf16.mxu0 %v2936_v17 }
 0x42b   :  { %v1131_v22 = vpop.permute.xlu1 %1130  ;;  %v1129_v43 = vpop.permute.xlu0 %1128  ;;  %2722 = vmatprep.subr.bf16.mxu1 %v2937_v19 }
 0x42c   :  { %v1134_v24 = vsel %vm836_vm9, %v1129_v43, %v1131_v22 }
 0x42d   :  { %2747 = vmatpush3.bf16.msra.mxu0 %v2938_v20 }
 0x42e   :  { %1977 = vmatmul.mubr.bf16.gmra.mrb[16].mxu0 %v1134_v24  ;;  %2723 = vmatpush3.bf16.msra.mxu1 %v2939_v21 }
 0x42f   :  { %v1290_v27 = vpop.permute.xlu1 %1289  ;;  %2748 = vmatprep.subr.bf16.mxu0 %v2940_v42  ;;  %v1288_v28 = vpop.permute.xlu0 %1287  ;;  %2724 = vmatprep.subr.bf16.mxu1 %v2941_v23 }
 0x430   :  { %v1295_v30 = vsel %vm838_vm10, %v1288_v28, %v1290_v27 }
 0x431   :  { %2749 = vmatpush3.bf16.msra.mxu0 %v2942_v25  ;;  %2066 = vmatprep.mubr.bf16.mxu0 %v1295_v30 }
 0x432   :  { %2725 = vmatpush3.bf16.msra.mxu1 %v2943_v6  ;;  %2750 = vmatprep.subr.bf16.mxu0 %v2944_v26 }
 0x433   :  { %v1294_v38 = vpop.permute.xlu1 %1293  ;;  %v1292_v44 = vpop.permute.xlu0 %1291  ;;  %2726 = vmatprep.subr.bf16.mxu1 %v2945_v29 }
 0x434   :  { %v1296_v32 = vsel %vm838_vm10, %v1292_v44, %v1294_v38 }
 0x435   :  { %2751 = vmatpush3.bf16.msra.mxu0 %v2946_v33 }
 0x436   :  { %2727 = vmatpush3.bf16.msra.mxu1 %v2947_v36  ;;  %2752 = vmatprep.subr.bf16.mxu0 %v2948_v37 }
 0x437   :  { %v1246_v40 = vpop.permute.xlu1 %1245  ;;  %v1244_v47 = vpop.permute.xlu0 %1243  ;;  %2790 = vmatprep.subr.bf16.mxu1 %v2950_v45 }
 0x438   :  { %v1248_v53 = vsel %vm836_vm9, %v1244_v47, %v1246_v40 }
 0x439   :  { %2018 = vmatmul.mubr.bf16.vlgmr.msra.gmra.mrb[16].mxu1 %v1235_v52  ;;  %2753 = vmatpush3.bf16.msra.mxu0 %v2949_v46 }
 0x43a   :  { %2025 = vmatprep.mubr.bf16.mxu1 %v1248_v53  ;;  %2791 = vmatpush3.bf16.msra.mxu1 %v2950_v45 }
 0x43b   :  { %v1234_v55 = vpop.permute.xlu1 %1233  ;;  %2754 = vmatprep.subr.bf16.mxu0 %v2951_v49  ;;  %v1232_v56 = vpop.permute.xlu0 %1231  ;;  %2792 = vmatprep.subr.bf16.mxu1 %v2953_v50 }
 0x43c   :  { %v1236_v34 = vsel %vm838_vm10, %v1232_v56, %v1234_v55 }
 0x43d   :  { %2755 = vmatpush3.bf16.msra.mxu0 %v2952_v54 }
 0x43e   :  { %2793 = vmatpush3.bf16.msra.mxu1 %v2953_v50 }
 0x43f   :  { %v1302_v61 = vpop.permute.xlu1 %1301  ;;  %v1300_v62 = vpop.permute.xlu0 %1299  ;;  %2794 = vmatprep.subr.bf16.mxu1 %v2955_v57 }
 0x440   :  { %2067 = vmatmul.mubr.bf16.vlgmr.msra.gmra.mrb[20].mxu0 %v3508_v9  ;;  %v1307_v63 = vsel %vm836_vm9, %v1300_v62, %v1302_v61  ;;  %v1262_v9 = vsel %vm3766_vm4, %v1260_v4, %v1261_v2  ;;  %vm3776_vm4 = vcmask 719872  }
 0x441   :  { %2026 = vmatmul.mubr.bf16.gmra.mrb[20].mxu1 %v1236_v34  ;;  %2074 = vmatprep.mubr.bf16.mxu0 %v1296_v32 }
 0x442   :  { %2795 = vmatpush3.bf16.msra.mxu1 %v2955_v57  ;;  %2806 = vmatprep.mubr.bf16.mxu1 %v1307_v63 }
 0x443   :  { %2796 = vmatprep.subr.bf16.mxu1 %v2956_v51  ;;  %v1306_v5 = vpop.permute.xlu1 %1305  ;;  %v1304_v1 = vpop.permute.xlu0 %1303 }
 0x444   :  { %v1308_v48 = vsel %vm836_vm9, %v1304_v1, %v1306_v5 }
 0x446   :  { %2797 = vmatpush3.bf16.msra.mxu1 %v2956_v51 }
 0x447   :  { %2798 = vmatprep.subr.bf16.mxu1 %v2957_v58 }
 0x448   :  { %2075 = vmatmul.mubr.bf16.gmra.mrb[24].mxu0 %v1262_v9 }
 0x44a   :  { %2799 = vmatpush3.bf16.msra.mxu1 %v2957_v58 }
 0x44b   :  { %2800 = vmatprep.subr.bf16.mxu1 %v2958_v35 }
 0x44e   :  { %2801 = vmatpush3.bf16.msra.mxu1 %v2958_v35 }
 0x44f   :  { %2802 = vmatprep.subr.bf16.mxu1 %v2959_v60 }
 0x452   :  { %2803 = vmatpush3.bf16.msra.mxu1 %v2959_v60 }
 0x453   :  { %2804 = vmatprep.subr.bf16.mxu1 %v2960_v41 }
 0x456   :  { %2805 = vmatpush3.bf16.msra.mxu1 %v2960_v41 }
 0x459   :  { %2807 = vmatmul.mubr.bf16.vlgmr.msra.gmra.mrb[24].mxu1 %v1308_v48 }
 0x4ec   :  { %v2672_v7 = vpop.f32.mrb[8].mxu1 }
 0x4ed   :  { %v2673_v8 = vpop.f32.mrb[9].mxu1 }
 0x4ee   :  { %v2674_v10 = vadd.f32 %v2673_v8, %v2672_v7  ;;  %v2675_v11 = vpop.f32.mrb[10].mxu1 }
 0x4ef   :  { %v2676_v12 = vpop.f32.mrb[11].mxu1 }
 0x4f0   :  { %v2677_v13 = vadd.f32 %v2676_v12, %v2675_v11 }
 0x4f3   :  { %v2700_v39 = vpop.f32.mrb[12].mxu0 }
 0x4f4   :  { %v2678_v14 = vpop.f32.mrb[12].mxu1  ;;  %v2701_v15 = vpop.f32.mrb[13].mxu0 }
 0x4f5   :  { %v2702_v16 = vadd.f32 %v2701_v15, %v2700_v39  ;;  %v2679_v17 = vpop.f32.mrb[13].mxu1  ;;  %v2703_v18 = vpop.f32.mrb[14].mxu0 }
 0x4f6   :  { %v2680_v3 = vadd.f32 %v2679_v17, %v2678_v14  ;;  %v2681_v19 = vpop.f32.mrb[14].mxu1  ;;  %v2704_v20 = vpop.f32.mrb[15].mxu0 }
 0x4f7   :  { %v1971_v21 = vadd.f32 %v2702_v16, %v2674_v10  ;;  %v2705_v22 = vadd.f32 %v2704_v20, %v2703_v18  ;;  %v2682_v43 = vpop.f32.mrb[15].mxu1 }
 0x4f8   :  { %v2683_v42 = vadd.f32 %v2682_v43, %v2681_v19 }
 0x4f9   :  { %v1974_v23 = vadd.f32 %v2705_v22, %v2677_v13 }
 0x501   :  { %v2706_v24 = vpop.f32.mrb[16].mxu0 }
 0x502   :  { %v2707_v25 = vpop.f32.mrb[17].mxu0 }
 0x503   :  { %v2708_v6 = vadd.f32 %v2707_v25, %v2706_v24  ;;  %v2709_v26 = vpop.f32.mrb[18].mxu0 }
 0x504   :  { %v2710_v27 = vpop.f32.mrb[19].mxu0 }
 0x505   :  { %v1979_v28 = vadd.f32 %v2708_v6, %v2680_v3  ;;  %v2711_v29 = vadd.f32 %v2710_v27, %v2709_v26 }
 0x507   :  { %v1982_v30 = vadd.f32 %v2711_v29, %v2683_v42 }
 0x50c   :  { %v2728_v33 = vpop.f32.mrb[16].mxu1 }
 0x50d   :  { %v2729_v36 = vpop.f32.mrb[17].mxu1 }
 0x50e   :  { %v2730_v37 = vadd.f32 %v2729_v36, %v2728_v33  ;;  %v2731_v38 = vpop.f32.mrb[18].mxu1 }
 0x50f   :  { %v2732_v44 = vpop.f32.mrb[19].mxu1 }
 0x510   :  { %v2020_v45 = vadd.f32 %v2730_v37, %v1971_v21  ;;  %v2733_v46 = vadd.f32 %v2732_v44, %v2731_v38 }
 0x512   :  { %v2023_v40 = vadd.f32 %v2733_v46, %v1974_v23 }
 0x513   :  { %v2756_v47 = vpop.f32.mrb[20].mxu0 }
 0x514   :  { %v2734_v49 = vpop.f32.mrb[20].mxu1  ;;  %v2757_v50 = vpop.f32.mrb[21].mxu0 }
 0x515   :  { %v2758_v52 = vadd.f32 %v2757_v50, %v2756_v47  ;;  %v2735_v53 = vpop.f32.mrb[21].mxu1  ;;  %v2759_v54 = vpop.f32.mrb[22].mxu0 }
 0x516   :  { %v2736_v55 = vadd.f32 %v2735_v53, %v2734_v49  ;;  %v2737_v56 = vpop.f32.mrb[22].mxu1  ;;  %v2760_v57 = vpop.f32.mrb[23].mxu0 }
 0x517   :  { %v2761_v59 = vadd.f32 %v2760_v57, %v2759_v54  ;;  %v2738_v61 = vpop.f32.mrb[23].mxu1  ;;  %v2069_v62 = vadd.f32 %v2758_v52, %v2020_v45 }
 0x518   :  { %v2028_v51 = vadd.f32 %v2736_v55, %v1979_v28  ;;  %v2739_v34 = vadd.f32 %v2738_v61, %v2737_v56 }
 0x519   :  { %v2072_v32 = vadd.f32 %v2761_v59, %v2023_v40 }
 0x51a   :  { %v2031_v63 = vadd.f32 %v2739_v34, %v1982_v30 }
 0x51b   :  { %v2762_v0 = vpop.f32.mrb[24].mxu0 }
 0x51c   :  { %v2763_v2 = vpop.f32.mrb[25].mxu0 }
 0x51d   :  { %v2764_v58 = vadd.f32 %v2763_v2, %v2762_v0  ;;  %v2765_v4 = vpop.f32.mrb[26].mxu0 }
 0x51e   :  { %v2766_v9 = vpop.f32.mrb[27].mxu0 }
 0x51f   :  { %v2767_v35 = vadd.f32 %v2766_v9, %v2765_v4  ;;  %v2077_v60 = vadd.f32 %v2764_v58, %v2028_v51 }
 0x521   :  { %v2080_v41 = vadd.f32 %v2767_v35, %v2031_v63 }
 0x52c   :  { %v2808_v5 = vpop.f32.mrb[24].mxu1 }
 0x52d   :  { %v3566_v1 = vadd.f32 %v2808_v5, %v2077_v60  ;;  %v2117_v48 = vpop.f32.mrb[25].mxu1 }
 0x52e   :  { %v3568_v7 = vadd.f32 %v2117_v48, %v2069_v62  ;;  %v2809_v8 = vpop.f32.mrb[26].mxu1 }
 0x52f   :  { %v3570_v10 = vadd.f32 %v2809_v8, %v2080_v41  ;;  %v2120_v11 = vpop.f32.mrb[27].mxu1  ;;  %v2145_v15 = vmul.f32 %v3566_v1, %v3566_v1 }
 0x530   :  { %v3572_v12 = vadd.f32 %v2120_v11, %v2072_v32  ;;  %v2143_v13 = vmul.f32 %v3568_v7, %v3568_v7 }
 0x531   :  { %v2146_v18 = vmul.f32 %v3570_v10, %v3570_v10 }
 0x532   :  { %v2134_v39 = vadd.f32 %v3572_v12, %v3568_v7  ;;  %v2144_v14 = vmul.f32 %v3572_v12, %v3572_v12 }
 0x534   :  { %v2135_v16 = vadd.f32 %v2134_v39, %v3566_v1  ;;  %v2147_v17 = vadd.f32 %v2144_v14, %v2143_v13 }
 0x536   :  { %v2136_v3 = vadd.f32 %v2135_v16, %v3570_v10  ;;  %v2148_v19 = vadd.f32 %v2147_v17, %v2145_v15 }
 0x538   :  { %v2137_v20 = vrot.slane %v2136_v3, 4  ;;  %v2149_v21 = vadd.f32 %v2148_v19, %v2146_v18 }
 0x53a   :  { %v2138_v22 = vadd.f32 %v2137_v20, %v2136_v3  ;;  %v2150_v43 = vrot.slane %v2149_v21, 4 }
 0x53c   :  { %v2139_v42 = vrot.slane %v2138_v22, 2  ;;  %v2151_v23 = vadd.f32 %v2150_v43, %v2149_v21 }
 0x53e   :  { %v2140_v24 = vadd.f32 %v2139_v42, %v2138_v22  ;;  %v2152_v25 = vrot.slane %v2151_v23, 2 }
 0x540   :  { %v2141_v6 = vrot.slane %v2140_v24, 1  ;;  %v2153_v26 = vadd.f32 %v2152_v25, %v2151_v23 }
 0x542   :  { %v2142_v27 = vadd.f32 %v2141_v6, %v2140_v24  ;;  %v2154_v28 = vrot.slane %v2153_v26, 1 }
 0x544   :  { %2161 = vrot.lane.b32.xlu1 %v2142_v27, %s3045_s7  ;;  %2157 = vrot.lane.b32.xlu0 %v2142_v27, %s3042_s27  ;;  %v2155_v29 = vadd.f32 %v2154_v28, %v2153_v26 }
 0x548   :  { %2165 = vrot.lane.b32.xlu1 %v2142_v27, %s3046_s8  ;;  %2219 = vrot.lane.b32.xlu0 %v2155_v29, %s3042_s27 }
 0x54c   :  { %2169 = vrot.lane.b32.xlu1 %v2142_v27, %s3047_s9  ;;  %2223 = vrot.lane.b32.xlu0 %v2155_v29, %s3045_s7 }
 0x550   :  { %2173 = vrot.lane.b32.xlu1 %v2142_v27, %s3048_s10  ;;  %2227 = vrot.lane.b32.xlu0 %v2155_v29, %s3046_s8 }
 0x554   :  { %2177 = vrot.lane.b32.xlu1 %v2142_v27, %s3049_s11  ;;  %2231 = vrot.lane.b32.xlu0 %v2155_v29, %s3047_s9 }
 0x558   :  { %2181 = vrot.lane.b32.xlu1 %v2142_v27, %s3050_s12  ;;  %2235 = vrot.lane.b32.xlu0 %v2155_v29, %s3048_s10 }
 0x55c   :  { %2185 = vrot.lane.b32.xlu1 %v2142_v27, %s3038_s25  ;;  %2239 = vrot.lane.b32.xlu0 %v2155_v29, %s3049_s11 }
 0x560   :  { %2189 = vrot.lane.b32.xlu1 %v2142_v27, %s3044_s6  ;;  %2243 = vrot.lane.b32.xlu0 %v2155_v29, %s3050_s12 }
 0x564   :  { %2193 = vrot.lane.b32.xlu1 %v2142_v27, %s3051_s1  ;;  %2247 = vrot.lane.b32.xlu0 %v2155_v29, %s3038_s25 }
 0x568   :  { %2197 = vrot.lane.b32.xlu1 %v2142_v27, %s3052_s13  ;;  %2251 = vrot.lane.b32.xlu0 %v2155_v29, %s3044_s6 }
 0x56c   :  { %2201 = vrot.lane.b32.xlu1 %v2142_v27, %s3053_s14  ;;  %2255 = vrot.lane.b32.xlu0 %v2155_v29, %s3051_s1 }
 0x570   :  { %2205 = vrot.lane.b32.xlu1 %v2142_v27, %s3054_s15  ;;  %2259 = vrot.lane.b32.xlu0 %v2155_v29, %s3052_s13 }
 0x574   :  { %2209 = vrot.lane.b32.xlu1 %v2142_v27, %s3055_s16  ;;  %2263 = vrot.lane.b32.xlu0 %v2155_v29, %s3053_s14 }
 0x578   :  { %2213 = vrot.lane.b32.xlu1 %v2142_v27, %s3056_s17  ;;  %2267 = vrot.lane.b32.xlu0 %v2155_v29, %s3054_s15 }
 0x57c   :  { %2275 = vrot.lane.b32.xlu1 %v2155_v29, %s3056_s17  ;;  %2271 = vrot.lane.b32.xlu0 %v2155_v29, %s3055_s16 }
 0x5b6   :  { %v2162_v30 = vpop.permute.xlu1 %2161  ;;  %v2158_v33 = vpop.permute.xlu0 %2157 }
 0x5b7   :  { %v2160_v52 = vadd.f32 %v2158_v33, %v2142_v27 }
 0x5b9   :  { %v2164_v55 = vadd.f32 %v2162_v30, %v2160_v52 }
 0x5ba   :  { %v2166_v36 = vpop.permute.xlu1 %2165  ;;  %v2220_v37 = vpop.permute.xlu0 %2219 }
 0x5bb   :  { %v2168_v59 = vadd.f32 %v2166_v36, %v2164_v55  ;;  %v2222_v61 = vadd.f32 %v2220_v37, %v2155_v29 }
 0x5be   :  { %v2170_v38 = vpop.permute.xlu1 %2169  ;;  %v2224_v44 = vpop.permute.xlu0 %2223 }
 0x5bf   :  { %v2172_v62 = vadd.f32 %v2170_v38, %v2168_v59  ;;  %v2226_v32 = vadd.f32 %v2224_v44, %v2222_v61 }
 0x5c2   :  { %v2174_v45 = vpop.permute.xlu1 %2173  ;;  %v2228_v46 = vpop.permute.xlu0 %2227 }
 0x5c3   :  { %v2176_v63 = vadd.f32 %v2174_v45, %v2172_v62  ;;  %v2230_v0 = vadd.f32 %v2228_v46, %v2226_v32  ;;  %v2132_v46 = vld [vmem:[%s3704_s3 + $0x2] sm:$0x1] }
 0x5c6   :  { %v2178_v40 = vpop.permute.xlu1 %2177  ;;  %v2232_v47 = vpop.permute.xlu0 %2231 }
 0x5c7   :  { %v2180_v2 = vadd.f32 %v2178_v40, %v2176_v63  ;;  %v2234_v9 = vadd.f32 %v2232_v47, %v2230_v0 }
 0x5ca   :  { %v2182_v49 = vpop.permute.xlu1 %2181  ;;  %v2236_v50 = vpop.permute.xlu0 %2235 }
 0x5cb   :  { %v2184_v35 = vadd.f32 %v2182_v49, %v2180_v2  ;;  %v2238_v60 = vadd.f32 %v2236_v50, %v2234_v9  ;;  %v2133_v49 = vld [vmem:[%s3704_s3 + $0x3] sm:$0x1]  ;;  %s3058_s3 = smov [#allocation8]  }
 0x5ce   :  { %v2186_v53 = vpop.permute.xlu1 %2185  ;;  %v2240_v54 = vpop.permute.xlu0 %2239 }
 0x5cf   :  { %v2188_v41 = vadd.f32 %v2186_v53, %v2184_v35  ;;  %v2242_v8 = vadd.f32 %v2240_v54, %v2238_v60 }
 0x5d2   :  { %v2190_v56 = vpop.permute.xlu1 %2189  ;;  %v2244_v57 = vpop.permute.xlu0 %2243 }
 0x5d3   :  { %v2192_v11 = vadd.f32 %v2190_v56, %v2188_v41  ;;  %v2246_v13 = vadd.f32 %v2244_v57, %v2242_v8 }
 0x5d6   :  { %v2194_v51 = vpop.permute.xlu1 %2193  ;;  %v2248_v34 = vpop.permute.xlu0 %2247 }
 0x5d7   :  { %v2196_v39 = vadd.f32 %v2194_v51, %v2192_v11  ;;  %v2250_v16 = vadd.f32 %v2248_v34, %v2246_v13 }
 0x5da   :  { %v2198_v58 = vpop.permute.xlu1 %2197  ;;  %v2252_v4 = vpop.permute.xlu0 %2251 }
 0x5db   :  { %v2200_v17 = vadd.f32 %v2198_v58, %v2196_v39  ;;  %v2254_v18 = vadd.f32 %v2252_v4, %v2250_v16 }
 0x5de   :  { %v2202_v5 = vpop.permute.xlu1 %2201  ;;  %v2256_v48 = vpop.permute.xlu0 %2255 }
 0x5df   :  { %v2204_v3 = vadd.f32 %v2202_v5, %v2200_v17  ;;  %v2258_v21 = vadd.f32 %v2256_v48, %v2254_v18 }
 0x5e2   :  { %v2206_v14 = vpop.permute.xlu1 %2205  ;;  %v2260_v15 = vpop.permute.xlu0 %2259 }
 0x5e3   :  { %v2208_v22 = vadd.f32 %v2206_v14, %v2204_v3  ;;  %v2262_v43 = vadd.f32 %v2260_v15, %v2258_v21 }
 0x5e6   :  { %v2210_v19 = vpop.permute.xlu1 %2209  ;;  %v2264_v20 = vpop.permute.xlu0 %2263 }
 0x5e7   :  { %v2212_v42 = vadd.f32 %v2210_v19, %v2208_v22  ;;  %v2266_v25 = vadd.f32 %v2264_v20, %v2262_v43 }
 0x5ea   :  { %v2214_v23 = vpop.permute.xlu1 %2213  ;;  %v2268_v24 = vpop.permute.xlu0 %2267 }
 0x5eb   :  { %v2216_v6 = vadd.f32 %v2214_v23, %v2212_v42  ;;  %v2270_v26 = vadd.f32 %v2268_v24, %v2266_v25 }
 0x5ed   :  { %v2217_v28 = vmul.f32 0.001953125, %v2216_v6 }
 0x5ee   :  { %v2272_v27 = vpop.permute.xlu0 %2271  ;;  %v2276_v30 = vpop.permute.xlu1 %2275 }
 0x5ef   :  { %v2274_v29 = vadd.f32 %v2272_v27, %v2270_v26  ;;  %v2280_v36 = vmul.f32 %v2217_v28, %v2217_v28 }
 0x5f1   :  { %v2278_v33 = vadd.f32 %v2276_v30, %v2274_v29 }
 0x5f3   :  { %v2279_v37 = vmul.f32 0.001953125, %v2278_v33 }
 0x5f5   :  { %v2281_v38 = vsub.f32 %v2279_v37, %v2280_v36 }
 0x5f7   :  { %v2282_v44 = vmax.f32 %v2281_v38, 0.0 }
 0x5f9   :  { %v2283_v45 = vadd.f32 1e-05, %v2282_v44 }
 0x5fb   :  { %2963 = vrsqrt.f32 %v2283_v45 }
 0x605   :  { %v2964_v40 = vpop.eup %2963 }
 0x606   :  { %v2285_v47 = vmul.f32 %v2964_v40, %v2132_v46 }
 0x608   :  { %2292 = vrot.lane.b32.xlu1 %v2285_v47, %s3055_s16  ;;  %2289 = vrot.lane.b32.xlu0 %v2285_v47, %s3056_s17  ;;  %v2286_v50 = vmul.f32 %v2285_v47, %v2217_v28 }
 0x60a   :  { %v2287_v52 = vsub.f32 %v2133_v49, %v2286_v50 }
 0x60c   :  { %2295 = vrot.lane.b32.xlu0 %v2285_v47, %s3054_s15  ;;  %2350 = vrot.lane.b32.xlu1 %v2287_v52, %s3056_s17 }
 0x610   :  { %2298 = vrot.lane.b32.xlu0 %v2285_v47, %s3053_s14  ;;  %2353 = vrot.lane.b32.xlu1 %v2287_v52, %s3055_s16 }
 0x614   :  { %2301 = vrot.lane.b32.xlu0 %v2285_v47, %s3052_s13  ;;  %2356 = vrot.lane.b32.xlu1 %v2287_v52, %s3054_s15 }
 0x618   :  { %2304 = vrot.lane.b32.xlu0 %v2285_v47, %s3051_s1  ;;  %2359 = vrot.lane.b32.xlu1 %v2287_v52, %s3053_s14 }
 0x61c   :  { %2307 = vrot.lane.b32.xlu0 %v2285_v47, %s3044_s6  ;;  %2362 = vrot.lane.b32.xlu1 %v2287_v52, %s3052_s13 }
 0x620   :  { %2310 = vrot.lane.b32.xlu0 %v2285_v47, %s3038_s25  ;;  %2365 = vrot.lane.b32.xlu1 %v2287_v52, %s3051_s1 }
 0x624   :  { %2313 = vrot.lane.b32.xlu0 %v2285_v47, %s3050_s12  ;;  %2368 = vrot.lane.b32.xlu1 %v2287_v52, %s3044_s6 }
 0x628   :  { %2316 = vrot.lane.b32.xlu0 %v2285_v47, %s3049_s11  ;;  %2371 = vrot.lane.b32.xlu1 %v2287_v52, %s3038_s25  ;;  %s2439_s25 = sshll.u32 %s3058_s3, 4  ;;  %s2440_s25 = int_to_ptr.vmem [resolvable:$true] %s2439_s25 }
 0x629   :  { %s3009_s26 = scalar_lea.vmem %s2440_s25, 512  ;;  %p3014_p3 = scmp.lt.s32.totalorder %s2440_s25, %s2440_s25 }
 0x62a   :  { %p3010_p2 = scmp.ne.s32.totalorder %s2440_s25, %s3009_s26  ;;  %p3015_p4 = scmp.lt.s32.totalorder %s3009_s26, %s3009_s26 }
 0x62c   :  { %2319 = vrot.lane.b32.xlu0 %v2285_v47, %s3048_s10  ;;  %2374 = vrot.lane.b32.xlu1 %v2287_v52, %s3050_s12  ;;  %p3016_p5 = por %p3015_p4, %p3014_p3 }
 0x62e   :  { %p3017_p6 = pnand %p3016_p5, %p3010_p2 }
 0x630   :  { %2322 = vrot.lane.b32.xlu0 %v2285_v47, %s3047_s9  ;;  %2377 = vrot.lane.b32.xlu1 %v2287_v52, %s3049_s11 }
 0x634   :  { %2325 = vrot.lane.b32.xlu0 %v2285_v47, %s3046_s8  ;;  %2380 = vrot.lane.b32.xlu1 %v2287_v52, %s3048_s10 }
 0x638   :  { %2328 = vrot.lane.b32.xlu0 %v2285_v47, %s3045_s7  ;;  %2383 = vrot.lane.b32.xlu1 %v2287_v52, %s3047_s9 }
 0x63c   :  { %2331 = vrot.lane.b32.xlu0 %v2285_v47, %s3042_s27  ;;  %2386 = vrot.lane.b32.xlu1 %v2287_v52, %s3046_s8 }
 0x640   :  { %2389 = vrot.lane.b32.xlu0 %v2287_v52, %s3045_s7  ;;  %2392 = vrot.lane.b32.xlu1 %v2287_v52, %s3042_s27 }
 0x67a   :  { %v2293_v53 = vpop.permute.xlu1 %2292  ;;  %v2290_v54 = vpop.permute.xlu0 %2289 }
 0x67b   :  { %v2334_v5 = vsel %vm3767_vm1, %v2285_v47, %v2290_v54  ;;  %vm3778_vm1 = vmmov %vm3772_vm15 }
 0x67c   :  { %v2335_v48 = vsel %vm813_vm7, %v2334_v5, %v2293_v53 }
 0x67e   :  { %v2296_v55 = vpop.permute.xlu0 %2295  ;;  %v2351_v56 = vpop.permute.xlu1 %2350 }
 0x67f   :  { %v2336_v13 = vsel %vm3768_vm2, %v2335_v48, %v2296_v55  ;;  %v2395_v15 = vsel %vm3770_vm8, %v2287_v52, %v2351_v56  ;;  %vm3779_vm2 = vcmask 850944  }
 0x680   :  { %vm3784_vm8 = vmmov %vm3779_vm2 }
 0x682   :  { %v2299_v57 = vpop.permute.xlu0 %2298  ;;  %v2354_v59 = vpop.permute.xlu1 %2353 }
 0x683   :  { %v2337_v39 = vsel %vm3769_vm12, %v2336_v13, %v2299_v57  ;;  %v2396_v3 = vsel %vm813_vm7, %v2395_v15, %v2354_v59  ;;  %vm3777_vm7 = vcmask 785408   ;;  %vm3780_vm12 = vmmov %vm3774_vm6 }
 0x686   :  { %v2302_v61 = vpop.permute.xlu0 %2301  ;;  %v2357_v62 = vpop.permute.xlu1 %2356 }
 0x687   :  { %v2338_v14 = vsel %vm819_vm14, %v2337_v39, %v2302_v61  ;;  %v2397_v20 = vsel %vm3771_vm13, %v2396_v3, %v2357_v62 }
 0x68a   :  { %v2305_v51 = vpop.permute.xlu0 %2304  ;;  %v2360_v34 = vpop.permute.xlu1 %2359 }
 0x68b   :  { %v2339_v16 = vsel %vm821_vm3, %v2338_v14, %v2305_v51  ;;  %v2398_v22 = vsel %vm3773_vm11, %v2397_v20, %v2360_v34 }
 0x68e   :  { %v2308_v32 = vpop.permute.xlu0 %2307  ;;  %v2363_v63 = vpop.permute.xlu1 %2362 }
 0x68f   :  { %v2340_v19 = vsel %vm823_vm0, %v2339_v16, %v2308_v32  ;;  %v2399_v42 = vsel %vm819_vm14, %v2398_v22, %v2363_v63  ;;  %vm3781_vm14 = vmmov %vm3775_vm5 }
 0x692   :  { %v2311_v0 = vpop.permute.xlu0 %2310  ;;  %v2366_v2 = vpop.permute.xlu1 %2365 }
 0x693   :  { %v2341_v21 = vsel %vm3772_vm15, %v2340_v19, %v2311_v0  ;;  %v2400_v6 = vsel %vm821_vm3, %v2399_v42, %v2366_v2  ;;  %vm3782_vm3 = vmmov %vm3776_vm4 }
 0x696   :  { %v2314_v58 = vpop.permute.xlu0 %2313  ;;  %v2369_v4 = vpop.permute.xlu1 %2368 }
 0x697   :  { %v2342_v43 = vsel %vm3774_vm6, %v2341_v21, %v2314_v58  ;;  %v2401_v27 = vsel %vm823_vm0, %v2400_v6, %v2369_v4  ;;  %vm3783_vm0 = vmmov %vm3777_vm7 }
 0x69a   :  { %v2317_v9 = vpop.permute.xlu0 %2316  ;;  %v2372_v35 = vpop.permute.xlu1 %2371 }
 0x69b   :  { %v2343_v23 = vsel %vm3775_vm5, %v2342_v43, %v2317_v9  ;;  %v2402_v29 = vsel %vm3778_vm1, %v2401_v27, %v2372_v35 }
 0x69e   :  { %v2320_v60 = vpop.permute.xlu0 %2319  ;;  %v2375_v41 = vpop.permute.xlu1 %2374 }
 0x69f   :  { %v2344_v26 = vsel %vm3776_vm4, %v2343_v23, %v2320_v60  ;;  %v2403_v33 = vsel %vm3780_vm12, %v2402_v29, %v2375_v41 }
 0x6a2   :  { %v2323_v8 = vpop.permute.xlu0 %2322  ;;  %v2378_v11 = vpop.permute.xlu1 %2377 }
 0x6a3   :  { %v2345_v28 = vsel %vm3777_vm7, %v2344_v26, %v2323_v8  ;;  %v2404_v44 = vsel %vm3781_vm14, %v2403_v33, %v2378_v11 }
 0x6a6   :  { %v2326_v17 = vpop.permute.xlu0 %2325  ;;  %v2381_v18 = vpop.permute.xlu1 %2380 }
 0x6a7   :  { %v2346_v30 = vsel %vm3779_vm2, %v2345_v28, %v2326_v17  ;;  %v2405_v46 = vsel %vm3782_vm3, %v2404_v44, %v2381_v18 }
 0x6aa   :  { %v2329_v24 = vpop.permute.xlu0 %2328  ;;  %v2384_v25 = vpop.permute.xlu1 %2383 }
 0x6ab   :  { %v2347_v36 = vsel %vm836_vm9, %v2346_v30, %v2329_v24  ;;  %v2406_v47 = vsel %vm3783_vm0, %v2405_v46, %v2384_v25 }
 0x6ae   :  { %v2332_v37 = vpop.permute.xlu0 %2331  ;;  %v2387_v38 = vpop.permute.xlu1 %2386 }
 0x6af   :  { %v2348_v45 = vsel %vm838_vm10, %v2347_v36, %v2332_v37  ;;  %v2407_v49 = vsel %vm3784_vm8, %v2406_v47, %v2387_v38 }
 0x6b0   :  { %v2413_v40 = vrot.slane %v2348_v45, %v3392_v31 }
 0x6b2   :  { %v2390_v50 = vpop.permute.xlu0 %2389  ;;  %v2393_v52 = vpop.permute.xlu1 %2392  ;;  %v2414_v54 = vmul.f32 %v2413_v40, %v3568_v7  ;;  %v2415_v56 = vmul.f32 %v2413_v40, %v3572_v12  ;;  %v2416_v57 = vmul.f32 %v2413_v40, %v3566_v1  ;;  %v2417_v59 = vmul.f32 %v2413_v40, %v3570_v10 }
 0x6b3   :  { %v2408_v53 = vsel %vm836_vm9, %v2407_v49, %v2390_v50 }
 0x6b4   :  { %v2409_v55 = vsel %vm838_vm10, %v2408_v53, %v2393_v52 }
 0x6b5   :  { %v2421_v61 = vrot.slane %v2409_v55, %v3392_v31 }
 0x6b7   :  { %v2422_v62 = vadd.f32 %v2421_v61, %v2414_v54  ;;  %v2423_v51 = vadd.f32 %v2421_v61, %v2415_v56  ;;  %v2424_v34 = vadd.f32 %v2421_v61, %v2416_v57  ;;  %v2425_v32 = vadd.f32 %v2421_v61, %v2417_v59 }
 0x6b9   :  { %v2426_v63 = vmax.f32 %v2422_v62, 0.0  ;;  %v2427_v0 = vmax.f32 %v2423_v51, 0.0  ;;  %v2428_v2 = vmax.f32 %v2424_v34, 0.0  ;;  %v2429_v7 = vmax.f32 %v2425_v32, 0.0 }
 0x6bb   :  { %2430 = vst [vmem:[#allocation8] sm:$0xff] %v2426_v63  ;;  %2431 = vst [vmem:[#allocation8 + $0x8] sm:$0xff] %v2427_v0 }
 0x6bc   :  { %2432 = vst [vmem:[#allocation8 + $0x10] sm:$0xff] %v2428_v2  ;;  %2433 = vst [vmem:[#allocation8 + $0x18] sm:$0xff] %v2429_v7 }
 0x6bd   :  { %3020 = shalt.err (!%p3017_p6)
}
 0x6be   :  { %s3021_s29 = scalar_lea.hbm %s3705_s4, 512 }
 0x6bf   :  { %p3022_p7 = scmp.ne.s32.totalorder %s3705_s4, %s3021_s29  ;;  %p3025_p8 = scmp.lt.u32.totalorder %s3021_s29, %s3705_s4 }
 0x6c1   :  { %p3027_p9 = pnand %p3025_p8, %p3022_p7 }
 0x6c3   :  { %3030 = shalt.err (!%p3027_p9)
}
 0x6c4   :  { %s3059_s7 = smov 128  }
 0x6c5   :  { %2445 = dma.vmem_to_hbm [thread:$0]  %s2440_s25, 512, %s3705_s4, [#allocation5], %s3059_s7, %s3059_s7, %s3056_s17  }
 0x6c6   :  { %3035 = dma.done.wait [#allocation5], 512  }
 0x6c7   :  { %3036 = vsyncadd [#allocation5], 4294966784 }
 0x6c8   :  { %2449 = vsyncpa [#allocation4], 1 }
 0x6c9   :  { %2450 = vsyncpa [#allocation7], 1 }
 0x6ca   :  { %2451 = vsyncpa [#allocation5], 1 }

</bundles_post_ra>
